<compile_context>
chip_gen: v7x
topology: tpu7x:2x2x1
jax: 0.10.0
libtpu: 0.0.40
codegen_flags: <defaults>
</compile_context>

<pallas_src>
import jax
import jax.numpy as jnp
from jax import lax
from jax.experimental import pallas as pl
from jax.experimental.pallas import tpu as pltpu

_LANE = 128


# ---------------------------------------------------------------------------
# Kernel: bn1 -> relu -> conv1(1x1) -> bn2 -> relu -> conv2(3x3, pad=1)
#         -> bn3 -> relu -> conv3(1x1) -> + residual
# One grid step = one batch element x one block of output rows.
# ---------------------------------------------------------------------------
def bottleneck_kernel(
    x_ref,                      # (1, H+2, Wp, Cp)  zero-padded NHWC input (f32)
    s1_ref, t1_ref,             # (1, Cp)           folded bn1 scale / shift
    w1_ref,                     # (Cp, Pp)          conv1 1x1 weights (bf16)
    s2_ref, t2_ref,             # (1, Pp)           folded bn2 (conv1 bias folded in)
    w2_ref,                     # (9*Pp, Pp)        conv2 3x3, tap-stacked (bf16)
    s3_ref, t3_ref,             # (1, Pp)           folded bn3 (conv2 bias folded in)
    w3_ref, b3_ref,             # (Pp, Cp), (1, Cp) conv3 1x1 weights (bf16) + bias
    o_ref,                      # (1, TH, W, Cp)    output row block (f32)
):
    TH, W = o_ref.shape[1], o_ref.shape[2]
    Hp, Wp, Cp = x_ref.shape[1], x_ref.shape[2], x_ref.shape[3]
    H = Hp - 2
    Pp = w1_ref.shape[1]
    mxu_dtype = w1_ref.dtype

    r = pl.program_id(1)
    row0 = pl.multiple_of(r * TH, TH)        # top halo row of this block (padded coords)

    # Load this row block plus its 1-row halo on each side (always in bounds:
    # the wrapper zero-pads H and W by 1 pixel).
    xw = x_ref[0, pl.ds(row0, TH + 2), :, :]                  # (TH+2, Wp, Cp) f32
    x2 = xw.reshape((TH + 2) * Wp, Cp)

    # bn1 + relu + conv1 (1x1 conv == channel matmul; its bias is folded into t2)
    h = jnp.maximum(x2 * s1_ref[...] + t1_ref[...], 0.0)
    h = jnp.dot(h.astype(mxu_dtype), w1_ref[...],
                preferred_element_type=jnp.float32)

    # bn2 + relu
    h = jnp.maximum(h * s2_ref[...] + t2_ref[...], 0.0)

    # conv2 (3x3, stride 1, pad 1): zero the halo positions that fall outside
    # the real image, then a single im2col matmul over all 9 taps.
    h3 = h.reshape(TH + 2, Wp, Pp)
    row_ids = lax.broadcasted_iota(jnp.int32, (TH + 2, Wp), 0) + row0
    col_ids = lax.broadcasted_iota(jnp.int32, (TH + 2, Wp), 1)
    valid = ((row_ids >= 1) & (row_ids <= H) &
             (col_ids >= 1) & (col_ids <= W)).astype(h3.dtype)
    h3 = (h3 * valid[:, :, None]).astype(mxu_dtype)

    cols = []
    for dy in range(3):                       # static unroll: 9 shifted windows
        for dx in range(3):
            cols.append(h3[dy:dy + TH, dx:dx + W, :].reshape(TH * W, Pp))
    im2col = jnp.concatenate(cols, axis=-1)                   # (TH*W, 9*Pp)
    h = jnp.dot(im2col, w2_ref[...], preferred_element_type=jnp.float32)

    # bn3 + relu + conv3 (1x1, expansion 2) + bias
    h = jnp.maximum(h * s3_ref[...] + t3_ref[...], 0.0)
    h = jnp.dot(h.astype(mxu_dtype), w3_ref[...],
                preferred_element_type=jnp.float32) + b3_ref[...]

    # residual add (downsample is None => inplanes == 2*planes == Cp real chans)
    res = xw[1:TH + 1, 1:W + 1, :].reshape(TH * W, Cp)
    o_ref[...] = (h + res).reshape(1, TH, W, Cp)


# ---------------------------------------------------------------------------
# Wrapper: NCHW in / NCHW out; folds BN + biases, pads channels to 128 lanes,
# pads H/W by 1 (conv2 halo), builds the grid/BlockSpecs.
# ---------------------------------------------------------------------------
def _round_up(n, m):
    return ((n + m - 1) // m) * m


def _pad_axis(a, axis, target):
    pad = target - a.shape[axis]
    if pad == 0:
        return a
    widths = [(0, 0)] * a.ndim
    widths[axis] = (0, pad)
    return jnp.pad(a, widths)


def bottleneck_pallas(x_nchw, p, *, row_tile=8, mxu_dtype=jnp.bfloat16, eps=1e-5):
    N, Cin, H, W = x_nchw.shape
    P = p["w1"].shape[0]                     # planes
    Cout = 2 * P                             # planes * expansion
    assert Cin == Cout, "downsample=None requires inplanes == planes * expansion"
    assert H % row_tile == 0, "row_tile must divide H"

    Cp = _round_up(Cin, _LANE)               # padded in/out channels (equal)
    Pp = _round_up(P, _LANE)                 # padded mid channels
    Wp = _round_up(W + 2, 8)                 # halo-padded W, rounded for sublanes

    # --- fold BatchNorm (eval mode) into per-channel scale/shift, fold conv
    #     biases b1/b2 into the following BN shifts -------------------------
    def bn_fold(g, b, m, v):
        s = g / jnp.sqrt(v + eps)
        return s, b - m * s

    s1, t1 = bn_fold(p["bn1_g"], p["bn1_b"], p["bn1_m"], p["bn1_v"])
    s2, t2 = bn_fold(p["bn2_g"], p["bn2_b"], p["bn2_m"], p["bn2_v"])
    s3, t3 = bn_fold(p["bn3_g"], p["bn3_b"], p["bn3_m"], p["bn3_v"])
    t2 = t2 + p["b1"] * s2                   # fold conv1 bias
    t3 = t3 + p["b2"] * s3                   # fold conv2 bias

    def pad_vec(v, c):
        return _pad_axis(v.reshape(1, -1).astype(jnp.float32), 1, c)

    s1p, t1p = pad_vec(s1, Cp), pad_vec(t1, Cp)
    s2p, t2p = pad_vec(s2, Pp), pad_vec(t2, Pp)
    s3p, t3p = pad_vec(s3, Pp), pad_vec(t3, Pp)
    b3p = pad_vec(p["b3"], Cp)

    # --- conv weights: OIHW -> (in, out), zero-padded, MXU dtype -----------
    w1 = _pad_axis(_pad_axis(p["w1"][:, :, 0, 0].T, 0, Cp), 1, Pp).astype(mxu_dtype)
    w3 = _pad_axis(_pad_axis(p["w3"][:, :, 0, 0].T, 0, Pp), 1, Cp).astype(mxu_dtype)
    taps = []
    for dy in range(3):                      # tap order must match the kernel
        for dx in range(3):
            taps.append(_pad_axis(_pad_axis(p["w2"][:, :, dy, dx].T, 0, Pp), 1, Pp))
    w2 = jnp.concatenate(taps, axis=0).astype(mxu_dtype)      # (9*Pp, Pp)

    # --- input: NCHW -> NHWC, channel pad to Cp, 1-pixel spatial halo pad ---
    x_nhwc = jnp.transpose(x_nchw, (0, 2, 3, 1)).astype(jnp.float32)
    x_pad = jnp.pad(x_nhwc,
                    ((0, 0), (1, 1), (1, Wp - (W + 1)), (0, Cp - Cin)))

    Hp = H + 2
    grid = (N, H // row_tile)

    def _const(shape):
        return pl.BlockSpec(shape, lambda n, r, _s=shape: (0,) * len(_s))

    out_nhwc = pl.pallas_call(
        bottleneck_kernel,
        out_shape=jax.ShapeDtypeStruct((N, H, W, Cp), jnp.float32),
        grid=grid,
        in_specs=[
            # full padded image per batch element; revisited (no re-DMA) across
            # row tiles since the block index is constant along that axis
            pl.BlockSpec((1, Hp, Wp, Cp), lambda n, r: (n, 0, 0, 0)),
            _const((1, Cp)), _const((1, Cp)),          # s1, t1
            _const((Cp, Pp)),                          # w1
            _const((1, Pp)), _const((1, Pp)),          # s2, t2
            _const((9 * Pp, Pp)),                      # w2 (tap-stacked)
            _const((1, Pp)), _const((1, Pp)),          # s3, t3
            _const((Pp, Cp)), _const((1, Cp)),         # w3, b3
        ],
        out_specs=pl.BlockSpec((1, row_tile, W, Cp), lambda n, r: (n, r, 0, 0)),
        compiler_params=pltpu.CompilerParams(
            dimension_semantics=("parallel", "parallel"),
            vmem_limit_bytes=32 * 1024 * 1024,
        ),
    )(x_pad, s1p, t1p, w1, s2p, t2p, w2, s3p, t3p, w3, b3p)

    out = out_nhwc[:, :, :, :Cout]
    return jnp.transpose(out, (0, 3, 1, 2))


# ---------------------------------------------------------------------------
# Deterministic parameters (PyTorch layouts) and pure-JAX reference.
# ---------------------------------------------------------------------------
def make_params(key, inplanes, planes):
    keys = jax.random.split(key, 16)

    def bn(kg, kb, km, kv, c):
        return (1.0 + 0.1 * jax.random.normal(kg, (c,), jnp.float32),
                0.1 * jax.random.normal(kb, (c,), jnp.float32),
                0.1 * jax.random.normal(km, (c,), jnp.float32),
                jnp.abs(jax.random.normal(kv, (c,), jnp.float32)) + 0.5)

    g1, b1_, m1, v1 = bn(keys[0], keys[1], keys[2], keys[3], inplanes)
    g2, b2_, m2, v2 = bn(keys[4], keys[5], keys[6], keys[7], planes)
    g3, b3_, m3, v3 = bn(keys[8], keys[9], keys[10], keys[11], planes)

    w1 = 0.1 * jax.random.normal(keys[12], (planes, inplanes, 1, 1), jnp.float32)
    w2 = 0.1 * jax.random.normal(keys[13], (planes, planes, 3, 3), jnp.float32)
    w3 = 0.1 * jax.random.normal(keys[14], (2 * planes, planes, 1, 1), jnp.float32)
    bkeys = jax.random.split(keys[15], 3)
    b1 = 0.1 * jax.random.normal(bkeys[0], (planes,), jnp.float32)
    b2 = 0.1 * jax.random.normal(bkeys[1], (planes,), jnp.float32)
    b3 = 0.1 * jax.random.normal(bkeys[2], (2 * planes,), jnp.float32)

    return dict(
        bn1_g=g1, bn1_b=b1_, bn1_m=m1, bn1_v=v1,
        bn2_g=g2, bn2_b=b2_, bn2_m=m2, bn2_v=v2,
        bn3_g=g3, bn3_b=b3_, bn3_m=m3, bn3_v=v3,
        w1=w1, b1=b1, w2=w2, b2=b2, w3=w3, b3=b3,
    )


def bottleneck_ref(x, p, *, matmul_dtype=jnp.float32, eps=1e-5):
    """NCHW reference (eval-mode BN). matmul_dtype=f32 is the PyTorch module's
    math; matmul_dtype=bf16 mirrors the kernel's MXU-input rounding exactly."""
    def bn(y, g, b, m, v):
        s = g / jnp.sqrt(v + eps)
        t = b - m * s
        return y * s[None, :, None, None] + t[None, :, None, None]

    def conv(y, w, b, padding):
        dn = lax.conv_dimension_numbers(y.shape, w.shape, ("NCHW", "OIHW", "NCHW"))
        out = lax.conv_general_dilated(
            y.astype(matmul_dtype), w.astype(matmul_dtype), (1, 1), padding,
            dimension_numbers=dn, preferred_element_type=jnp.float32)
        return out + b[None, :, None, None]

    out = jax.nn.relu(bn(x, p["bn1_g"], p["bn1_b"], p["bn1_m"], p["bn1_v"]))
    out = conv(out, p["w1"], p["b1"], [(0, 0), (0, 0)])
    out = jax.nn.relu(bn(out, p["bn2_g"], p["bn2_b"], p["bn2_m"], p["bn2_v"]))
    out = conv(out, p["w2"], p["b2"], [(1, 1), (1, 1)])
    out = jax.nn.relu(bn(out, p["bn3_g"], p["bn3_b"], p["bn3_m"], p["bn3_v"]))
    out = conv(out, p["w3"], p["b3"], [(0, 0), (0, 0)])
    return out + x


if __name__ == "__main__":
    # Small shapes consistent with the module: stride=1, downsample=None
    # => inplanes == planes * expansion (= planes * 2).
    N, planes, H, W = 2, 4, 16, 16
    inplanes = planes * 2                    # 8

    key = jax.random.PRNGKey(0)
    kx, kp = jax.random.split(key)
    x = jax.random.normal(kx, (N, inplanes, H, W), jnp.float32)   # NCHW
    params = make_params(kp, inplanes, planes)

    run = jax.jit(bottleneck_pallas)
    out = jax.block_until_ready(run(x, params))
    assert out.shape == (N, 2 * planes, H, W), out.shape

    # Tight check vs. a reference using the same bf16-at-the-MXU rounding.
    ref_bf16 = jax.block_until_ready(
        bottleneck_ref(x, params, matmul_dtype=jnp.bfloat16))
    err_bf16 = float(jnp.max(jnp.abs(out - ref_bf16)))
    assert jnp.allclose(out, ref_bf16, rtol=1e-2, atol=1e-2), err_bf16

    # Loose bf16-precision bound vs. the full-f32 (PyTorch-module) math.
    ref_f32 = jax.block_until_ready(bottleneck_ref(x, params))
    err_f32 = float(jnp.max(jnp.abs(out - ref_f32)))
    assert jnp.allclose(out, ref_f32, rtol=1e-1, atol=1e-1), err_f32

    print("KERNEL_OK")
</pallas_src>

<mosaic_0001>
module attributes {stable_mosaic.version = 11 : i64} {
  func.func @bottleneck_kernel(%arg0: i32, %arg1: i32, %arg2: memref<1x18x24x128xf32, #tpu.memory_space<vmem>>, %arg3: memref<1x128xf32, #tpu.memory_space<vmem>>, %arg4: memref<1x128xf32, #tpu.memory_space<vmem>>, %arg5: memref<128x128xbf16, #tpu.memory_space<vmem>>, %arg6: memref<1x128xf32, #tpu.memory_space<vmem>>, %arg7: memref<1x128xf32, #tpu.memory_space<vmem>>, %arg8: memref<1152x128xbf16, #tpu.memory_space<vmem>>, %arg9: memref<1x128xf32, #tpu.memory_space<vmem>>, %arg10: memref<1x128xf32, #tpu.memory_space<vmem>>, %arg11: memref<128x128xbf16, #tpu.memory_space<vmem>>, %arg12: memref<1x128xf32, #tpu.memory_space<vmem>>, %arg13: memref<1x8x16x128xf32, #tpu.memory_space<vmem>>) attributes {dimension_semantics = [#tpu.dimension_semantics<parallel>, #tpu.dimension_semantics<parallel>], iteration_bounds = array<i64: 2, 2>, scalar_prefetch = 0 : i64, scratch_operands = 0 : i64, tpu.core_type = #tpu.core_type<tc>, window_params = [{transform_indices = @transform_0, window_bounds = array<i64: 1, 18, 24, 128>}, {pipeline_mode = #tpu.pipeline_mode<synchronous>, transform_indices = @transform_1, window_bounds = array<i64: 1, 128>}, {pipeline_mode = #tpu.pipeline_mode<synchronous>, transform_indices = @transform_2, window_bounds = array<i64: 1, 128>}, {pipeline_mode = #tpu.pipeline_mode<synchronous>, transform_indices = @transform_3, window_bounds = array<i64: 128, 128>}, {pipeline_mode = #tpu.pipeline_mode<synchronous>, transform_indices = @transform_4, window_bounds = array<i64: 1, 128>}, {pipeline_mode = #tpu.pipeline_mode<synchronous>, transform_indices = @transform_5, window_bounds = array<i64: 1, 128>}, {pipeline_mode = #tpu.pipeline_mode<synchronous>, transform_indices = @transform_6, window_bounds = array<i64: 1152, 128>}, {pipeline_mode = #tpu.pipeline_mode<synchronous>, transform_indices = @transform_7, window_bounds = array<i64: 1, 128>}, {pipeline_mode = #tpu.pipeline_mode<synchronous>, transform_indices = @transform_8, window_bounds = array<i64: 1, 128>}, {pipeline_mode = #tpu.pipeline_mode<synchronous>, transform_indices = @transform_9, window_bounds = array<i64: 128, 128>}, {pipeline_mode = #tpu.pipeline_mode<synchronous>, transform_indices = @transform_10, window_bounds = array<i64: 1, 128>}, {transform_indices = @transform_11, window_bounds = array<i64: 1, 8, 16, 128>}]} {
    %c8_i32 = arith.constant 8 : i32
    %0 = arith.muli %arg1, %c8_i32 : i32
    %1 = tpu.assume_multiple %0, 8 : i32
    %c0 = arith.constant 0 : index
    %2 = arith.index_cast %1 : i32 to index
    %c0_0 = arith.constant 0 : index
    %c0_1 = arith.constant 0 : index
    %3 = vector.load %arg2[%c0, %2, %c0_0, %c0_1] : memref<1x18x24x128xf32, #tpu.memory_space<vmem>>, vector<1x10x24x128xf32>
    %4 = vector.shape_cast %3 : vector<1x10x24x128xf32> to vector<10x24x128xf32>
    %5 = vector.shape_cast %4 : vector<10x24x128xf32> to vector<240x128xf32>
    %c0_2 = arith.constant 0 : index
    %c0_3 = arith.constant 0 : index
    %6 = vector.load %arg3[%c0_2, %c0_3] : memref<1x128xf32, #tpu.memory_space<vmem>>, vector<1x128xf32>
    %7 = vector.broadcast %6 : vector<1x128xf32> to vector<240x128xf32>
    %8 = arith.mulf %5, %7 : vector<240x128xf32>
    %c0_4 = arith.constant 0 : index
    %c0_5 = arith.constant 0 : index
    %9 = vector.load %arg4[%c0_4, %c0_5] : memref<1x128xf32, #tpu.memory_space<vmem>>, vector<1x128xf32>
    %10 = vector.broadcast %9 : vector<1x128xf32> to vector<240x128xf32>
    %11 = arith.addf %8, %10 : vector<240x128xf32>
    %cst = arith.constant 0.000000e+00 : f32
    %12 = vector.broadcast %cst : f32 to vector<240x128xf32>
    %13 = arith.maximumf %11, %12 : vector<240x128xf32>
    %14 = arith.truncf %13 : vector<240x128xf32> to vector<240x128xbf16>
    %c0_6 = arith.constant 0 : index
    %c0_7 = arith.constant 0 : index
    %15 = vector.load %arg5[%c0_6, %c0_7] : memref<128x128xbf16, #tpu.memory_space<vmem>>, vector<128x128xbf16>
    %cst_8 = arith.constant dense<0.000000e+00> : vector<240x128xf32>
    %16 = tpu.matmul %14, %15, %cst_8 {dimension_numbers = #tpu.dot_dimension_numbers<[1], [0], [0], [1], [0, 0, 1, 1], [], []>} : vector<240x128xbf16>, vector<128x128xbf16>, vector<240x128xf32> -> vector<240x128xf32>
    %c0_9 = arith.constant 0 : index
    %c0_10 = arith.constant 0 : index
    %17 = vector.load %arg6[%c0_9, %c0_10] : memref<1x128xf32, #tpu.memory_space<vmem>>, vector<1x128xf32>
    %18 = vector.broadcast %17 : vector<1x128xf32> to vector<240x128xf32>
    %19 = arith.mulf %16, %18 : vector<240x128xf32>
    %c0_11 = arith.constant 0 : index
    %c0_12 = arith.constant 0 : index
    %20 = vector.load %arg7[%c0_11, %c0_12] : memref<1x128xf32, #tpu.memory_space<vmem>>, vector<1x128xf32>
    %21 = vector.broadcast %20 : vector<1x128xf32> to vector<240x128xf32>
    %22 = arith.addf %19, %21 : vector<240x128xf32>
    %cst_13 = arith.constant 0.000000e+00 : f32
    %23 = vector.broadcast %cst_13 : f32 to vector<240x128xf32>
    %24 = arith.maximumf %22, %23 : vector<240x128xf32>
    %25 = vector.shape_cast %24 : vector<240x128xf32> to vector<10x24x128xf32>
    %26 = tpu.iota {dimensions = array<i32: 0>} : vector<10x24xi32>
    %27 = vector.broadcast %1 : i32 to vector<10x24xi32>
    %28 = arith.addi %26, %27 : vector<10x24xi32>
    %29 = tpu.iota {dimensions = array<i32: 1>} : vector<10x24xi32>
    %c1_i32 = arith.constant 1 : i32
    %30 = vector.broadcast %c1_i32 : i32 to vector<10x24xi32>
    %31 = arith.cmpi sge, %28, %30 : vector<10x24xi32>
    %c16_i32 = arith.constant 16 : i32
    %32 = vector.broadcast %c16_i32 : i32 to vector<10x24xi32>
    %33 = arith.cmpi sle, %28, %32 : vector<10x24xi32>
    %34 = arith.andi %31, %33 : vector<10x24xi1>
    %c1_i32_14 = arith.constant 1 : i32
    %35 = vector.broadcast %c1_i32_14 : i32 to vector<10x24xi32>
    %36 = arith.cmpi sge, %29, %35 : vector<10x24xi32>
    %37 = arith.andi %34, %36 : vector<10x24xi1>
    %c16_i32_15 = arith.constant 16 : i32
    %38 = vector.broadcast %c16_i32_15 : i32 to vector<10x24xi32>
    %39 = arith.cmpi sle, %29, %38 : vector<10x24xi32>
    %40 = arith.andi %37, %39 : vector<10x24xi1>
    %41 = arith.extui %40 : vector<10x24xi1> to vector<10x24xi32>
    %42 = arith.sitofp %41 : vector<10x24xi32> to vector<10x24xf32>
    %43 = vector.shape_cast %42 : vector<10x24xf32> to vector<10x24x1xf32>
    %44 = vector.broadcast %43 : vector<10x24x1xf32> to vector<10x24x128xf32>
    %45 = arith.mulf %25, %44 : vector<10x24x128xf32>
    %46 = arith.truncf %45 : vector<10x24x128xf32> to vector<10x24x128xbf16>
    %47 = vector.extract_strided_slice %46 {offsets = [0, 0, 0], sizes = [8, 16, 128], strides = [1, 1, 1]} : vector<10x24x128xbf16> to vector<8x16x128xbf16>
    %48 = vector.shape_cast %47 : vector<8x16x128xbf16> to vector<128x128xbf16>
    %49 = vector.extract_strided_slice %46 {offsets = [0, 1, 0], sizes = [8, 16, 128], strides = [1, 1, 1]} : vector<10x24x128xbf16> to vector<8x16x128xbf16>
    %50 = vector.shape_cast %49 : vector<8x16x128xbf16> to vector<128x128xbf16>
    %51 = vector.extract_strided_slice %46 {offsets = [0, 2, 0], sizes = [8, 16, 128], strides = [1, 1, 1]} : vector<10x24x128xbf16> to vector<8x16x128xbf16>
    %52 = vector.shape_cast %51 : vector<8x16x128xbf16> to vector<128x128xbf16>
    %53 = vector.extract_strided_slice %46 {offsets = [1, 0, 0], sizes = [8, 16, 128], strides = [1, 1, 1]} : vector<10x24x128xbf16> to vector<8x16x128xbf16>
    %54 = vector.shape_cast %53 : vector<8x16x128xbf16> to vector<128x128xbf16>
    %55 = vector.extract_strided_slice %46 {offsets = [1, 1, 0], sizes = [8, 16, 128], strides = [1, 1, 1]} : vector<10x24x128xbf16> to vector<8x16x128xbf16>
    %56 = vector.shape_cast %55 : vector<8x16x128xbf16> to vector<128x128xbf16>
    %57 = vector.extract_strided_slice %46 {offsets = [1, 2, 0], sizes = [8, 16, 128], strides = [1, 1, 1]} : vector<10x24x128xbf16> to vector<8x16x128xbf16>
    %58 = vector.shape_cast %57 : vector<8x16x128xbf16> to vector<128x128xbf16>
    %59 = vector.extract_strided_slice %46 {offsets = [2, 0, 0], sizes = [8, 16, 128], strides = [1, 1, 1]} : vector<10x24x128xbf16> to vector<8x16x128xbf16>
    %60 = vector.shape_cast %59 : vector<8x16x128xbf16> to vector<128x128xbf16>
    %61 = vector.extract_strided_slice %46 {offsets = [2, 1, 0], sizes = [8, 16, 128], strides = [1, 1, 1]} : vector<10x24x128xbf16> to vector<8x16x128xbf16>
    %62 = vector.shape_cast %61 : vector<8x16x128xbf16> to vector<128x128xbf16>
    %63 = vector.extract_strided_slice %46 {offsets = [2, 2, 0], sizes = [8, 16, 128], strides = [1, 1, 1]} : vector<10x24x128xbf16> to vector<8x16x128xbf16>
    %64 = vector.shape_cast %63 : vector<8x16x128xbf16> to vector<128x128xbf16>
    %65 = tpu.concatenate %48, %50, %52, %54, %56, %58, %60, %62, %64 in 1 : vector<128x128xbf16>, vector<128x128xbf16>, vector<128x128xbf16>, vector<128x128xbf16>, vector<128x128xbf16>, vector<128x128xbf16>, vector<128x128xbf16>, vector<128x128xbf16>, vector<128x128xbf16> -> vector<128x1152xbf16>
    %c0_16 = arith.constant 0 : index
    %c0_17 = arith.constant 0 : index
    %66 = vector.load %arg8[%c0_16, %c0_17] : memref<1152x128xbf16, #tpu.memory_space<vmem>>, vector<1152x128xbf16>
    %cst_18 = arith.constant dense<0.000000e+00> : vector<128x128xf32>
    %67 = tpu.matmul %65, %66, %cst_18 {dimension_numbers = #tpu.dot_dimension_numbers<[1], [0], [0], [1], [0, 0, 1, 1], [], []>} : vector<128x1152xbf16>, vector<1152x128xbf16>, vector<128x128xf32> -> vector<128x128xf32>
    %c0_19 = arith.constant 0 : index
    %c0_20 = arith.constant 0 : index
    %68 = vector.load %arg9[%c0_19, %c0_20] : memref<1x128xf32, #tpu.memory_space<vmem>>, vector<1x128xf32>
    %69 = vector.broadcast %68 : vector<1x128xf32> to vector<128x128xf32>
    %70 = arith.mulf %67, %69 : vector<128x128xf32>
    %c0_21 = arith.constant 0 : index
    %c0_22 = arith.constant 0 : index
    %71 = vector.load %arg10[%c0_21, %c0_22] : memref<1x128xf32, #tpu.memory_space<vmem>>, vector<1x128xf32>
    %72 = vector.broadcast %71 : vector<1x128xf32> to vector<128x128xf32>
    %73 = arith.addf %70, %72 : vector<128x128xf32>
    %cst_23 = arith.constant 0.000000e+00 : f32
    %74 = vector.broadcast %cst_23 : f32 to vector<128x128xf32>
    %75 = arith.maximumf %73, %74 : vector<128x128xf32>
    %76 = arith.truncf %75 : vector<128x128xf32> to vector<128x128xbf16>
    %c0_24 = arith.constant 0 : index
    %c0_25 = arith.constant 0 : index
    %77 = vector.load %arg11[%c0_24, %c0_25] : memref<128x128xbf16, #tpu.memory_space<vmem>>, vector<128x128xbf16>
    %cst_26 = arith.constant dense<0.000000e+00> : vector<128x128xf32>
    %78 = tpu.matmul %76, %77, %cst_26 {dimension_numbers = #tpu.dot_dimension_numbers<[1], [0], [0], [1], [0, 0, 1, 1], [], []>} : vector<128x128xbf16>, vector<128x128xbf16>, vector<128x128xf32> -> vector<128x128xf32>
    %c0_27 = arith.constant 0 : index
    %c0_28 = arith.constant 0 : index
    %79 = vector.load %arg12[%c0_27, %c0_28] : memref<1x128xf32, #tpu.memory_space<vmem>>, vector<1x128xf32>
    %80 = vector.broadcast %79 : vector<1x128xf32> to vector<128x128xf32>
    %81 = arith.addf %78, %80 : vector<128x128xf32>
    %82 = vector.extract_strided_slice %4 {offsets = [1, 1, 0], sizes = [8, 16, 128], strides = [1, 1, 1]} : vector<10x24x128xf32> to vector<8x16x128xf32>
    %83 = vector.shape_cast %82 : vector<8x16x128xf32> to vector<128x128xf32>
    %84 = arith.addf %81, %83 : vector<128x128xf32>
    %85 = vector.shape_cast %84 : vector<128x128xf32> to vector<1x8x16x128xf32>
    %c0_29 = arith.constant 0 : index
    %c0_30 = arith.constant 0 : index
    %c0_31 = arith.constant 0 : index
    %c0_32 = arith.constant 0 : index
    %86 = vector.load %arg13[%c0_29, %c0_30, %c0_31, %c0_32] : memref<1x8x16x128xf32, #tpu.memory_space<vmem>>, vector<1x8x16x128xf32>
    tpu.vector_store %arg13[%c0_29, %c0_30, %c0_31, %c0_32], %85 {strides = array<i32>} : memref<1x8x16x128xf32, #tpu.memory_space<vmem>>, vector<1x8x16x128xf32>,
    return
  }
  func.func @transform_0(%arg0: i32, %arg1: i32) -> (i32, i32, i32, i32) {
    %c0_i32 = arith.constant 0 : i32
    %c0_i32_0 = arith.constant 0 : i32
    %c0_i32_1 = arith.constant 0 : i32
    %c0_i32_2 = arith.constant 0 : i32
    return %arg0, %c0_i32, %c0_i32_0, %c0_i32_1 : i32, i32, i32, i32
  }
  func.func @transform_1(%arg0: i32, %arg1: i32) -> (i32, i32) {
    %c0_i32 = arith.constant 0 : i32
    %c0_i32_0 = arith.constant 0 : i32
    %c0_i32_1 = arith.constant 0 : i32
    return %c0_i32, %c0_i32_0 : i32, i32
  }
  func.func @transform_2(%arg0: i32, %arg1: i32) -> (i32, i32) {
    %c0_i32 = arith.constant 0 : i32
    %c0_i32_0 = arith.constant 0 : i32
    %c0_i32_1 = arith.constant 0 : i32
    return %c0_i32, %c0_i32_0 : i32, i32
  }
  func.func @transform_3(%arg0: i32, %arg1: i32) -> (i32, i32) {
    %c0_i32 = arith.constant 0 : i32
    %c0_i32_0 = arith.constant 0 : i32
    %c0_i32_1 = arith.constant 0 : i32
    return %c0_i32, %c0_i32_0 : i32, i32
  }
  func.func @transform_4(%arg0: i32, %arg1: i32) -> (i32, i32) {
    %c0_i32 = arith.constant 0 : i32
    %c0_i32_0 = arith.constant 0 : i32
    %c0_i32_1 = arith.constant 0 : i32
    return %c0_i32, %c0_i32_0 : i32, i32
  }
  func.func @transform_5(%arg0: i32, %arg1: i32) -> (i32, i32) {
    %c0_i32 = arith.constant 0 : i32
    %c0_i32_0 = arith.constant 0 : i32
    %c0_i32_1 = arith.constant 0 : i32
    return %c0_i32, %c0_i32_0 : i32, i32
  }
  func.func @transform_6(%arg0: i32, %arg1: i32) -> (i32, i32) {
    %c0_i32 = arith.constant 0 : i32
    %c0_i32_0 = arith.constant 0 : i32
    %c0_i32_1 = arith.constant 0 : i32
    return %c0_i32, %c0_i32_0 : i32, i32
  }
  func.func @transform_7(%arg0: i32, %arg1: i32) -> (i32, i32) {
    %c0_i32 = arith.constant 0 : i32
    %c0_i32_0 = arith.constant 0 : i32
    %c0_i32_1 = arith.constant 0 : i32
    return %c0_i32, %c0_i32_0 : i32, i32
  }
  func.func @transform_8(%arg0: i32, %arg1: i32) -> (i32, i32) {
    %c0_i32 = arith.constant 0 : i32
    %c0_i32_0 = arith.constant 0 : i32
    %c0_i32_1 = arith.constant 0 : i32
    return %c0_i32, %c0_i32_0 : i32, i32
  }
  func.func @transform_9(%arg0: i32, %arg1: i32) -> (i32, i32) {
    %c0_i32 = arith.constant 0 : i32
    %c0_i32_0 = arith.constant 0 : i32
    %c0_i32_1 = arith.constant 0 : i32
    return %c0_i32, %c0_i32_0 : i32, i32
  }
  func.func @transform_10(%arg0: i32, %arg1: i32) -> (i32, i32) {
    %c0_i32 = arith.constant 0 : i32
    %c0_i32_0 = arith.constant 0 : i32
    %c0_i32_1 = arith.constant 0 : i32
    return %c0_i32, %c0_i32_0 : i32, i32
  }
  func.func @transform_11(%arg0: i32, %arg1: i32) -> (i32, i32, i32, i32) {
    %c0_i32 = arith.constant 0 : i32
    %c0_i32_0 = arith.constant 0 : i32
    %c0_i32_1 = arith.constant 0 : i32
    return %arg0, %arg1, %c0_i32, %c0_i32_0 : i32, i32, i32, i32
  }
}

</mosaic_0001>

<bundles_post_ra>
// kernel: bottleneck_pallas.1
= control target key start
LH: loop header
LB: loop body
LE: loop exit
PB: predicated region body
PF: predicated region fallthrough
CT: control target
= control target key end

     0   :  { %s3625_s17 = smov 0   ;;  %s3627_s18 = smov 0   ;;  %s4780_s0 = inlined_call_operand.vmem [shape: f32[2,18,24,128], index: 0, kind: input, shape index: {}]   ;;  %s4781_s1 = inlined_call_operand.vmem [shape: f32[1,128], index: 1, kind: input, shape index: {}]   ;;  %s4782_s2 = inlined_call_operand.vmem [shape: f32[1,128], index: 2, kind: input, shape index: {}]   ;;  %s4783_s3 = inlined_call_operand.vmem [shape: bf16[128,128], index: 3, kind: input, shape index: {}]   ;;  %s4784_s4 = inlined_call_operand.vmem [shape: f32[1,128], index: 4, kind: input, shape index: {}]   ;;  %s4785_s5 = inlined_call_operand.vmem [shape: f32[1,128], index: 5, kind: input, shape index: {}]   ;;  %s4786_s6 = inlined_call_operand.vmem [shape: bf16[1152,128], index: 6, kind: input, shape index: {}]   ;;  %s4787_s7 = inlined_call_operand.vmem [shape: f32[1,128], index: 7, kind: input, shape index: {}]   ;;  %s4788_s8 = inlined_call_operand.vmem [shape: f32[1,128], index: 8, kind: input, shape index: {}]   ;;  %s4789_s9 = inlined_call_operand.vmem [shape: bf16[128,128], index: 9, kind: input, shape index: {}]   ;;  %s4790_s10 = inlined_call_operand.vmem [shape: f32[1,128], index: 10, kind: input, shape index: {}]   ;;  %s4791_s11 = inlined_call_operand.vmem [shape: f32[2,16,16,128], index: 11, kind: output, shape index: {}]  }
   0x1   :  { %s3629_s19 = smov 0   ;;  %s3631_s20 = smov 0  }
   0x2   :  { %s3633_s21 = smov 0  }
   0x3 LB: > { %s30_s22 = sadd.s32 1, %s3553_s19  ;;  %s33_s23 = sadd.s32 1, %s3557_s20  ;;  %s3561_s21 = sphi %s3633_s21, %s21_s21   ;;  %s3557_s20 = sphi %s3631_s20, %s4799_s20   ;;  %s3553_s19 = sphi %s3629_s19, %s4798_s19   ;;  %s3549_s18 = sphi %s3627_s18, %s4797_s18   ;;  %s3545_s17 = sphi %s3625_s17, %s4796_s17  }
   0x4   : > { %p31_p0 = scmp.ge.s32.totalorder %s30_s22, 2  ;;  %p2810_p1 = scmp.ge.s32.totalorder %s3561_s21, 1 }
   0x5   : > { %p351_p2 = scmp.lt.s32.totalorder %s3561_s21, 5 }
   0x6   : > { %s4801_s22 = smov (%p31_p0, %s30_s22), 0  ;;  %s4803_s23 = smov (!%p31_p0, %s33_s23), %s3557_s20 }
   0x7   : > { %p352_p3 = pnand %p2810_p1, %p351_p2  ;;  %p35_p4 = scmp.ge.s32.totalorder %s4803_s23, 2 }
   0x8   : > { %v3411_v0 = vld [vmem:[%s4783_s3] sm:$0xff] (!%p352_p3)   ;;  %v3563_v1 = vmov (!%p352_p3), 0.0   ;;  %v3412_v2 = vld [vmem:[%s4783_s3 + $0x8] sm:$0xff] (!%p352_p3)   ;;  %vm3564_vm0 = vmmov (!%p352_p3), 0   ;;  %p396_p5 = scmp.lt.s32.totalorder (!%p352_p3), %s3549_s18, 1  ;;  %s2817_s28 = smul.u32 (!%p352_p3), 192, %s3545_s17  ;;  %v886_v4 = vlaneseq (!%p352_p3) }
   0x9   : > { %s4805_s23 = smov (%p35_p4, %s4803_s23), 0  ;;  %355 = sbr.rel (%p352_p3) target bundleno = 938 (0x3aa), region = 64 }
   0xa   : > { %3228 = vmatprep.subr.bf16.mxu0 (!%p352_p3), %v3563_v1  ;;  %3244 = vmatprep.mubr.msk.bf16.mxu0 (!%p352_p3), %vm3564_vm0, %v3563_v1  ;;  %v3413_v3 = vld [vmem:[%s4783_s3 + $0x10] sm:$0xff] (!%p352_p3)   ;;  %s3676_s13 = sshll.u32 (!%p352_p3), %s3545_s17, 3  ;;  %v3684_v5 = vld [vmem:[%s4781_s1] ss:$0 sm:$0xff] (!%p352_p3)  ;;  %v3414_v6 = vld [vmem:[%s4783_s3 + $0x18] sm:$0xff] (!%p352_p3)   ;;  %v3696_v10 = vshrl.u32 (!%p352_p3), %v886_v4, 7 }
   0xb   : > { %3229 = vmatpush3.bf16.msra.mxu0 (!%p352_p3), %v3411_v0  ;;  %p404_p6 = scmp.lt.s32.totalorder (!%p352_p3), %s3676_s13, 15  ;;  %v889_v15 = vstv (!%p352_p3), %s3676_s13  ;;  %v3708_v16 = vld [vmem:[%s4782_s2] ss:$0 sm:$0xff] (!%p352_p3)  ;;  %v3732_v32 = vand.u32 (!%p352_p3), 127, %v886_v4  ;;  %v3416_v34 = vld [vmem:[%s4783_s3 + $0x28] sm:$0xff] (!%p352_p3)   ;;  %v3417_v46 = vld [vmem:[%s4783_s3 + $0x30] sm:$0xff] (!%p352_p3)  }
   0xc   : > { %3230 = vmatprep.subr.bf16.mxu0 (!%p352_p3), %v3563_v1  ;;  %v3415_v22 = vld [vmem:[%s4783_s3 + $0x20] sm:$0xff] (!%p352_p3)   ;;  %v890_v24 = vadd.s32 (!%p352_p3), %v889_v15, %v3696_v10  ;;  %v912_v33 = vsub.s32 (!%p352_p3), 0, %v3696_v10  ;;  %v927_v37 = vsub.s32 (!%p352_p3), 1, %v3696_v10  ;;  %v942_v38 = vsub.s32 (!%p352_p3), 2, %v3696_v10  ;;  %v3421_v61 = vld [vmem:[%s4786_s6 + $0x48] sm:$0xff] (!%p352_p3)  }
   0xd   : > { %vm900_vm3 = vcmp.ge.s32.totalorder (!%p352_p3), %v3732_v32, 1  ;;  %vm903_vm4 = vcmp.le.s32.totalorder (!%p352_p3), %v3732_v32, 16  ;;  %v3419_v56 = vld [vmem:[%s4786_s6 + $0x40] sm:$0xff] (!%p352_p3)   ;;  %vm1231_vm13 = vcmask (!%p352_p3), 1046528   ;;  %vm1110_vm14 = vsmask.f32 (!%p352_p3), 7424 }
   0xe   : > { %vm894_vm1 = vcmp.ge.s32.totalorder (!%p352_p3), %v890_v24, 1  ;;  %vm896_vm2 = vcmp.le.s32.totalorder (!%p352_p3), %v890_v24, 16  ;;  %v3420_v57 = vld [vmem:[%s4786_s6] sm:$0xff] (!%p352_p3)   ;;  %2940 = vmatprep.subr.bf16.mxu1 (!%p352_p3), %v3419_v56 }
   0xf   : > { %3231 = vmatpush3.bf16.msra.mxu0 (!%p352_p3), %v3412_v2  ;;  %vm3788_vm5 = vmand (!%p352_p3), %vm894_vm1, %vm896_vm2  ;;  %2941 = vmatpush3.bf16.msra.mxu1 (!%p352_p3), %v3420_v57 }
  0x10   : > { %s4807_s18 = smov (!%p396_p5, %s3549_s18), 1  ;;  %3232 = vmatprep.subr.bf16.mxu0 %v3563_v1  ;;  %2942 = vmatprep.subr.bf16.mxu1 %v3421_v61  ;;  %vm3821_vm6 = vmand %vm3788_vm5, %vm900_vm3 }
  0x11   : > { %s3368_s12 = smul.u32 432, %s4807_s18  ;;  %s2814_s17 = sshll.u32 %s4807_s18, 5  ;;  %vm904_vm7 = vmand %vm3821_vm6, %vm903_vm4 }
  0x12   : > { %s405_s30 = scalar_select %p404_p6, %s3676_s13, 15 }
  0x13   : > { %s400_s16 = scalar_lea.vmem %s4780_s0, %s3368_s12  ;;  %3233 = vmatpush3.bf16.msra.mxu0 %v3413_v3 }
  0x14   : > { %s3690_s29 = scalar_lea.vmem %s400_s16, %s2817_s28  ;;  %3234 = vmatprep.subr.bf16.mxu0 %v3563_v1  ;;  %s2813_s12 = sshll.u32 %s405_s30, 1 }
  0x15   : > { %v416_v7 = vld [vmem:[%s3690_s29] sm:$0xff]  ;;  %v417_v8 = vld [vmem:[%s3690_s29 + $0x8] sm:$0xff]  ;;  %v418_v9 = vld [vmem:[%s3690_s29 + $0x10] sm:$0xff]  ;;  %s3715_s14 = sadd.s32 %s2814_s17, %s2813_s12 }
  0x16   : > { %v453_v11 = vmul.f32 %v3684_v5, %v416_v7  ;;  %v454_v12 = vmul.f32 %v3684_v5, %v417_v8  ;;  %v419_v13 = vld [vmem:[%s3690_s29 + $0x18] sm:$0xff]  ;;  %v420_v14 = vld [vmem:[%s3690_s29 + $0x20] sm:$0xff]  ;;  %v455_v17 = vmul.f32 %v3684_v5, %v418_v9  ;;  %v421_v19 = vld [vmem:[%s3690_s29 + $0x28] sm:$0xff]  ;;  %s2815_s12 = sshll.u32 %s3715_s14, 3 }
  0x17   : > { %v456_v18 = vmul.f32 %v3684_v5, %v419_v13  ;;  %v422_v20 = vld [vmem:[%s3690_s29 + $0x30] sm:$0xff]  ;;  %v423_v21 = vld [vmem:[%s3690_s29 + $0x38] sm:$0xff]  ;;  %3235 = vmatpush3.bf16.msra.mxu0 %v3414_v6  ;;  %v457_v23 = vmul.f32 %v3684_v5, %v420_v14  ;;  %v458_v27 = vmul.f32 %v3684_v5, %v421_v19  ;;  %v424_v36 = vld [vmem:[%s3690_s29 + $0x40] sm:$0xff]  ;;  %s4700_s24 = scalar_lea.vmem %s4791_s11, %s2815_s12 }
  0x18   : > { %3236 = vmatprep.subr.bf16.mxu0 %v3563_v1  ;;  %v490_v25 = vadd.f32 %v3708_v16, %v453_v11  ;;  %v491_v26 = vadd.f32 %v3708_v16, %v454_v12  ;;  %v459_v28 = vmul.f32 %v3684_v5, %v422_v20  ;;  %v492_v29 = vadd.f32 %v3708_v16, %v455_v17  ;;  %v425_v43 = vld [vmem:[%s3690_s29 + $0x48] sm:$0xff]  ;;  %v426_v44 = vld [vmem:[%s3690_s29 + $0x50] sm:$0xff]  ;;  %v432_v45 = vld [vmem:[%s3690_s29 + $0x80] sm:$0xff] }
  0x19   : > { %v493_v30 = vadd.f32 %v3708_v16, %v456_v18  ;;  %v460_v31 = vmul.f32 %v3684_v5, %v423_v21  ;;  %v3739_v35 = vadd.f32 %v3708_v16, %v457_v23  ;;  %v3746_v41 = vadd.f32 %v3708_v16, %v458_v27  ;;  %v433_v50 = vld [vmem:[%s3690_s29 + $0x88] sm:$0xff]  ;;  %v434_v51 = vld [vmem:[%s3690_s29 + $0x90] sm:$0xff]  ;;  %v435_v52 = vld [vmem:[%s3690_s29 + $0x98] sm:$0xff] }
  0x1a   : > { %v520_v39 = vmax.f32 %v490_v25, 0.0  ;;  %v521_v40 = vmax.f32 %v491_v26, 0.0  ;;  %v3749_v42 = vadd.f32 %v3708_v16, %v459_v28  ;;  %v522_v47 = vmax.f32 %v492_v29, 0.0  ;;  %v427_v54 = vld [vmem:[%s3690_s29 + $0x58] sm:$0xff]  ;;  %v436_v55 = vld [vmem:[%s3690_s29 + $0xa0] sm:$0xff]  ;;  %v437_v60 = vld [vmem:[%s3690_s29 + $0xa8] sm:$0xff] }
  0x1b   : > { %3237 = vmatpush3.bf16.msra.mxu0 %v3415_v22  ;;  %v523_v48 = vmax.f32 %v493_v30, 0.0  ;;  %v3758_v49 = vadd.f32 %v3708_v16, %v460_v31  ;;  %v461_v53 = vmul.f32 %v3684_v5, %v424_v36  ;;  %v524_v58 = vmax.f32 %v3739_v35, 0.0  ;;  %v428_v2 = vld [vmem:[%s3690_s29 + $0x60] sm:$0xff]  ;;  %v438_v4 = vld [vmem:[%s3690_s29 + $0xb0] sm:$0xff]  ;;  %v3418_v7 = vld [vmem:[%s4783_s3 + $0x38] sm:$0xff]  }
  0x1c   : > { %3238 = vmatprep.subr.bf16.mxu0 %v3563_v1  ;;  %v462_v59 = vmul.f32 %v3684_v5, %v425_v43  ;;  %v550_v62 = vpack.c.bf16 %v521_v40, %v520_v39  ;;  %v525_v63 = vmax.f32 %v3746_v41, 0.0  ;;  %v526_v0 = vmax.f32 %v3749_v42, 0.0  ;;  %v439_v13 = vld [vmem:[%s3690_s29 + $0xb8] sm:$0xff]  ;;  %v440_v20 = vld [vmem:[%s3690_s29 + $0xc0] sm:$0xff]  ;;  %v3422_v21 = vld [vmem:[%s4786_s6 + $0x8] sm:$0xff]  }
  0x1d   : > { %v469_v3 = vmul.f32 %v3684_v5, %v432_v45  ;;  %v3795_v8 = vpack.c.bf16 %v523_v48, %v522_v47  ;;  %v527_v9 = vmax.f32 %v3758_v49, 0.0  ;;  %v463_v11 = vmul.f32 %v3684_v5, %v426_v44  ;;  %v441_v31 = vld [vmem:[%s3690_s29 + $0xc8] sm:$0xff]  ;;  %v442_v43 = vld [vmem:[%s3690_s29 + $0xd0] sm:$0xff]  ;;  %2943 = vmatpush3.bf16.msra.mxu1 %v3422_v21  ;;  %v444_v26 = vld [vmem:[%s3690_s29 + $0xe0] sm:$0xff] }
  0x1e   : > { %v470_v12 = vmul.f32 %v3684_v5, %v433_v50  ;;  %v3802_v14 = vadd.f32 %v3708_v16, %v461_v53  ;;  %v471_v18 = vmul.f32 %v3684_v5, %v434_v51  ;;  %v472_v19 = vmul.f32 %v3684_v5, %v435_v52  ;;  %v429_v53 = vld [vmem:[%s3690_s29 + $0x68] sm:$0xff] }
  0x1f   : > { %3239 = vmatpush3.bf16.msra.mxu0 %v3416_v34  ;;  %v506_v17 = vadd.f32 %v3708_v16, %v469_v3  ;;  %v3812_v22 = vadd.f32 %v3708_v16, %v462_v59  ;;  %v464_v23 = vmul.f32 %v3684_v5, %v427_v54  ;;  %v473_v25 = vmul.f32 %v3684_v5, %v436_v55  ;;  %v443_v59 = vld [vmem:[%s3690_s29 + $0xd8] sm:$0xff] }
  0x20   : > { %3240 = vmatprep.subr.bf16.mxu0 %v3563_v1  ;;  %v507_v24 = vadd.f32 %v3708_v16, %v470_v12  ;;  %v508_v28 = vadd.f32 %v3708_v16, %v471_v18  ;;  %v509_v29 = vadd.f32 %v3708_v16, %v472_v19  ;;  %v474_v30 = vmul.f32 %v3684_v5, %v437_v60  ;;  %v431_v18 = vld [vmem:[%s3690_s29 + $0x78] sm:$0xff] }
  0x21   : > { %v536_v27 = vmax.f32 %v506_v17, 0.0  ;;  %v465_v34 = vmul.f32 %v3684_v5, %v428_v2  ;;  %v510_v39 = vadd.f32 %v3708_v16, %v473_v25  ;;  %v475_v40 = vmul.f32 %v3684_v5, %v438_v4  ;;  %v430_v4 = vld [vmem:[%s3690_s29 + $0x70] sm:$0xff] }
  0x22   : > { %v537_v36 = vmax.f32 %v507_v24, 0.0  ;;  %v538_v44 = vmax.f32 %v508_v28, 0.0  ;;  %v539_v45 = vmax.f32 %v509_v29, 0.0  ;;  %v476_v47 = vmul.f32 %v3684_v5, %v439_v13 }
  0x23   : > { %3241 = vmatpush3.bf16.msra.mxu0 %v3417_v46  ;;  %v511_v46 = vadd.f32 %v3708_v16, %v474_v30  ;;  %v540_v50 = vmax.f32 %v510_v39, 0.0  ;;  %v512_v51 = vadd.f32 %v3708_v16, %v475_v40  ;;  %v477_v52 = vmul.f32 %v3684_v5, %v440_v20 }
  0x24   : > { %3242 = vmatprep.subr.bf16.mxu0 %v3563_v1  ;;  %v3840_v48 = vpack.c.bf16 %v537_v36, %v536_v27  ;;  %v3845_v54 = vpack.c.bf16 %v539_v45, %v538_v44  ;;  %v513_v56 = vadd.f32 %v3708_v16, %v476_v47  ;;  %v478_v57 = vmul.f32 %v3684_v5, %v441_v31  ;;  %v445_v31 = vld [vmem:[%s3690_s29 + $0xe8] sm:$0xff] }
  0x25   : > { %v541_v55 = vmax.f32 %v511_v46, 0.0  ;;  %v542_v60 = vmax.f32 %v512_v51, 0.0  ;;  %v514_v61 = vadd.f32 %v3708_v16, %v477_v52  ;;  %v3852_v2 = vsel %vm904_vm7, 1.0, %v3563_v1 }
  0x26   : > { %v479_v3 = vmul.f32 %v3684_v5, %v442_v43  ;;  %v515_v12 = vadd.f32 %v3708_v16, %v478_v57  ;;  %v913_v13 = vrot.slane %v3852_v2, %v912_v33  ;;  %v3865_v17 = vadd.f32 %v3708_v16, %v463_v11 }
  0x27   : > { %3243 = vmatpush3.bf16.msra.mxu0 %v3418_v7  ;;  %v3856_v6 = vpack.c.bf16 %v541_v55, %v540_v50  ;;  %v543_v7 = vmax.f32 %v513_v56, 0.0  ;;  %v480_v19 = vmul.f32 %v3684_v5, %v443_v59  ;;  %v3871_v21 = vadd.f32 %v3708_v16, %v464_v23 }
  0x28   : > { %v516_v20 = vadd.f32 %v3708_v16, %v479_v3  ;;  %v545_v25 = vmax.f32 %v515_v12, 0.0  ;;  %915 = vbcast.lane.b32.xlu0 %v913_v13, 256  ;;  %923 = vbcast.lane.b32.xlu1 %v913_v13, 272  ;;  %v928_v11 = vrot.slane %v3852_v2, %v927_v37  ;;  %v466_v27 = vmul.f32 %v3684_v5, %v429_v53 }
  0x29   : > { %v3873_v24 = vpack.c.bf16 %v543_v7, %v542_v60  ;;  %v467_v28 = vmul.f32 %v3684_v5, %v430_v4  ;;  %v517_v29 = vadd.f32 %v3708_v16, %v480_v19  ;;  %v528_v23 = vmax.f32 %v3802_v14, 0.0  ;;  %v3428_v19 = vld [vmem:[%s4786_s6 + $0x18] sm:$0xff]  }
  0x2a   : > { %3245 = vmatmul.mubr.bf16.vlgmr.msra.gmra.mrb[0].mxu0 %v550_v62  ;;  %v544_v62 = vmax.f32 %v514_v61, 0.0  ;;  %v546_v30 = vmax.f32 %v516_v20, 0.0  ;;  %v529_v36 = vmax.f32 %v3812_v22, 0.0  ;;  %v468_v39 = vmul.f32 %v3684_v5, %v431_v18  ;;  %v3429_v20 = vld [vmem:[%s4786_s6 + $0x148] sm:$0xff]  }
  0x2b   : > { %3248 = vmatprep.mubr.msk.bf16.mxu0 %vm3564_vm0, %v3563_v1  ;;  %v530_v43 = vmax.f32 %v3865_v17, 0.0  ;;  %v3890_v44 = vadd.f32 %v3708_v16, %v465_v34  ;;  %v547_v45 = vmax.f32 %v517_v29, 0.0  ;;  %v481_v46 = vmul.f32 %v3684_v5, %v444_v26  ;;  %v3427_v17 = vld [vmem:[%s4786_s6 + $0x58] sm:$0xff]   ;;  %v3434_v26 = vld [vmem:[%s4786_s6 + $0x110] sm:$0xff]  }
  0x2c   : > { %v3886_v40 = vpack.c.bf16 %v545_v25, %v544_v62  ;;  %v531_v47 = vmax.f32 %v3871_v21, 0.0  ;;  %919 = vbcast.lane.b32.xlu0 %v913_v13, 264  ;;  %930 = vbcast.lane.b32.xlu1 %v928_v11, 256  ;;  %v482_v14 = vmul.f32 %v3684_v5, %v445_v31  ;;  %v888_v22 = vadd.s32 8, %v3696_v10  ;;  %v3430_v21 = vld [vmem:[%s4786_s6 + $0x108] sm:$0xff]   ;;  %v3431_v25 = vld [vmem:[%s4786_s6 + $0x60] sm:$0xff]  }
  0x2d   : > { %v3897_v50 = vadd.f32 %v3708_v16, %v466_v27  ;;  %v3900_v51 = vadd.f32 %v3708_v16, %v467_v28  ;;  %v3902_v52 = vpack.c.bf16 %v547_v45, %v546_v30  ;;  %v518_v34 = vadd.f32 %v3708_v16, %v481_v46  ;;  %v3435_v27 = vld [vmem:[%s4786_s6 + $0x68] sm:$0xff]   ;;  %v3437_v29 = vld [vmem:[%s4786_s6 + $0x158] sm:$0xff]   ;;  %v3439_v31 = vld [vmem:[%s4786_s6 + $0x70] sm:$0xff]  }
  0x2e   : > { %v3907_v53 = vadd.f32 %v3708_v16, %v468_v39  ;;  %v519_v55 = vadd.f32 %v3708_v16, %v482_v14  ;;  %v891_v5 = vadd.s32 %v889_v15, %v888_v22  ;;  %v532_v56 = vmax.f32 %v3890_v44, 0.0  ;;  %v3436_v28 = vld [vmem:[%s4786_s6 + $0x28] sm:$0xff]   ;;  %v3438_v30 = vld [vmem:[%s4786_s6 + $0x118] sm:$0xff]   ;;  %v3442_v39 = vld [vmem:[%s4786_s6 + $0x120] sm:$0xff]  }
  0x2f   : > { %v943_v57 = vrot.slane %v3852_v2, %v942_v38  ;;  %v548_v59 = vmax.f32 %v518_v34, 0.0  ;;  %v533_v16 = vmax.f32 %v3897_v50, 0.0  ;;  %v534_v15 = vmax.f32 %v3900_v51, 0.0  ;;  %v3445_v44 = vld [vmem:[%s4786_s6 + $0x168] sm:$0xff]   ;;  %v3447_v46 = vld [vmem:[%s4786_s6 + $0x170] sm:$0xff]   ;;  %v3449_v14 = vld [vmem:[%s4786_s6 + $0x178] sm:$0xff]  }
  0x30   : > { %934 = vbcast.lane.b32.xlu0 %v928_v11, 264  ;;  %938 = vbcast.lane.b32.xlu1 %v928_v11, 272  ;;  %v549_v60 = vmax.f32 %v519_v55, 0.0  ;;  %vm895_vm8 = vcmp.ge.s32.totalorder %v891_v5, 1  ;;  %vm897_vm9 = vcmp.le.s32.totalorder %v891_v5, 16  ;;  %v552_v61 = vpack.c.bf16 %v525_v63, %v524_v58  ;;  %v3432_v11 = vld [vmem:[%s4786_s6 + $0x20] sm:$0xff]  }
  0x31   : > { %vm899_vm10 = vmand %vm895_vm8, %vm897_vm9  ;;  %v535_v38 = vmax.f32 %v3907_v53, 0.0  ;;  %v972_v3 = vsub.s32 4, %v3696_v10  ;;  %v987_v7 = vsub.s32 5, %v3696_v10  ;;  %v1002_v12 = vsub.s32 6, %v3696_v10  ;;  %v3446_v45 = vld [vmem:[%s4786_s6 + $0x128] sm:$0xff]   ;;  %v3451_v22 = vld [vmem:[%s4786_s6 + $0xc0] sm:$0xff]  }
  0x32   : > { %3249 = vmatmul.mubr.bf16.gmra.mrb[4].mxu0 %v3795_v8  ;;  %v957_v8 = vsub.s32 3, %v3696_v10  ;;  %v3927_v4 = vpack.c.bf16 %v549_v60, %v548_v59  ;;  %vm902_vm11 = vmand %vm899_vm10, %vm900_vm3  ;;  %v1017_v41 = vsub.s32 7, %v3696_v10  ;;  %v553_v32 = vpack.c.bf16 %v527_v9, %v526_v0  ;;  %v4077_v51 = vld [vmem:[%s4786_s6 + $0x200] sm:$0xff]  }
  0x33   : > { %3252 = vmatprep.mubr.msk.bf16.mxu0 %vm3564_vm0, %v3563_v1  ;;  %vm905_vm12 = vmand %vm902_vm11, %vm903_vm4  ;;  %v973_v63 = vrot.slane %v3852_v2, %v972_v3  ;;  %v988_v13 = vrot.slane %v3852_v2, %v987_v7  ;;  %v554_v18 = vpack.c.bf16 %v529_v36, %v528_v23  ;;  %v1003_v42 = vrot.slane %v3852_v2, %v1002_v12  ;;  %v3440_v23 = vld [vmem:[%s4786_s6 + $0x30] sm:$0xff]   ;;  %v3441_v36 = vld [vmem:[%s4786_s6 + $0x160] sm:$0xff]  }
  0x34   : > { %945 = vbcast.lane.b32.xlu0 %v943_v57, 256  ;;  %949 = vbcast.lane.b32.xlu1 %v943_v57, 264  ;;  %v958_v35 = vrot.slane %v3852_v2, %v957_v8  ;;  %v3938_v58 = vsel %vm905_vm12, 1.0, %v3563_v1  ;;  %v555_v49 = vpack.c.bf16 %v531_v47, %v530_v43  ;;  %v1018_v0 = vrot.slane %v3852_v2, %v1017_v41  ;;  %v3444_v43 = vld [vmem:[%s4786_s6 + $0x38] sm:$0xff]   ;;  %v3448_v47 = vld [vmem:[%s4786_s6 + $0x130] sm:$0xff]  }
  0x35   : > { %v556_v9 = vpack.c.bf16 %v533_v16, %v532_v56  ;;  %v1033_v62 = vrot.slane %v3938_v58, %v912_v33  ;;  %v557_v2 = vpack.c.bf16 %v535_v38, %v534_v15  ;;  %v3423_v33 = vld [vmem:[%s4786_s6 + $0x50] sm:$0xff]   ;;  %v1048_v50 = vrot.slane %v3938_v58, %v927_v37  ;;  %v4088_v10 = vld [vmem:[%s4785_s5] ss:$0 sm:$0xff] }
  0x36   : > { %2944 = vmatprep.subr.bf16.mxu1 %v3423_v33 }
  0x38   : > { %953 = vbcast.lane.b32.xlu0 %v943_v57, 272  ;;  %960 = vbcast.lane.b32.xlu1 %v958_v35, 256 }
  0x3a   : > { %3253 = vmatmul.mubr.bf16.gmra.mrb[8].mxu0 %v552_v61 }
  0x3b   : > { %3256 = vmatprep.mubr.msk.bf16.mxu0 %vm3564_vm0, %v3563_v1 }
  0x3c   : > { %964 = vbcast.lane.b32.xlu0 %v958_v35, 264  ;;  %968 = vbcast.lane.b32.xlu1 %v958_v35, 272 }
  0x40   : > { %975 = vbcast.lane.b32.xlu0 %v973_v63, 256  ;;  %979 = vbcast.lane.b32.xlu1 %v973_v63, 264 }
  0x42   : > { %3257 = vmatmul.mubr.bf16.gmra.mrb[12].mxu0 %v553_v32 }
  0x43   : > { %3260 = vmatprep.mubr.msk.bf16.mxu0 %vm3564_vm0, %v3563_v1 }
  0x44   : > { %983 = vbcast.lane.b32.xlu0 %v973_v63, 272  ;;  %990 = vbcast.lane.b32.xlu1 %v988_v13, 256 }
  0x48   : > { %994 = vbcast.lane.b32.xlu0 %v988_v13, 264  ;;  %998 = vbcast.lane.b32.xlu1 %v988_v13, 272 }
  0x4a   : > { %3261 = vmatmul.mubr.bf16.gmra.mrb[16].mxu0 %v554_v18 }
  0x4b   : > { %3264 = vmatprep.mubr.msk.bf16.mxu0 %vm3564_vm0, %v3563_v1 }
  0x4c   : > { %1005 = vbcast.lane.b32.xlu0 %v1003_v42, 256  ;;  %1009 = vbcast.lane.b32.xlu1 %v1003_v42, 264 }
  0x50   : > { %1013 = vbcast.lane.b32.xlu0 %v1003_v42, 272  ;;  %1020 = vbcast.lane.b32.xlu1 %v1018_v0, 256 }
  0x52   : > { %3265 = vmatmul.mubr.bf16.gmra.mrb[20].mxu0 %v555_v49 }
  0x53   : > { %3268 = vmatprep.mubr.msk.bf16.mxu0 %vm3564_vm0, %v3563_v1 }
  0x54   : > { %1024 = vbcast.lane.b32.xlu0 %v1018_v0, 264  ;;  %1028 = vbcast.lane.b32.xlu1 %v1018_v0, 272 }
  0x58   : > { %1035 = vbcast.lane.b32.xlu0 %v1033_v62, 256  ;;  %1039 = vbcast.lane.b32.xlu1 %v1033_v62, 264 }
  0x5a   : > { %3269 = vmatmul.mubr.bf16.gmra.mrb[24].mxu0 %v556_v9 }
  0x5b   : > { %3272 = vmatprep.mubr.msk.bf16.mxu0 %vm3564_vm0, %v3563_v1 }
  0x5c   : > { %1043 = vbcast.lane.b32.xlu0 %v1033_v62, 272  ;;  %1050 = vbcast.lane.b32.xlu1 %v1048_v50, 256 }
  0x60   : > { %1054 = vbcast.lane.b32.xlu0 %v1048_v50, 264  ;;  %1058 = vbcast.lane.b32.xlu1 %v1048_v50, 272 }
  0x62   : > { %3273 = vmatmul.mubr.bf16.gmra.mrb[28].mxu0 %v557_v2 }
  0x63   : > { %3276 = vmatprep.mubr.msk.bf16.mxu0 %vm3564_vm0, %v3563_v1 }
  0x6a   : > { %3277 = vmatmul.mubr.bf16.gmra.mrb[32].mxu0 %v3840_v48  ;;  %v3424_v48 = vld [vmem:[%s4786_s6 + $0x10] sm:$0xff]  }
  0x6b   : > { %3280 = vmatprep.mubr.msk.bf16.mxu0 %vm3564_vm0, %v3563_v1  ;;  %2945 = vmatpush3.bf16.msra.mxu1 %v3424_v48 }
  0x6c   : > { %2946 = vmatprep.subr.bf16.mxu1 %v3427_v17 }
  0x6f   : > { %2947 = vmatpush3.bf16.msra.mxu1 %v3428_v19 }
  0x70   : > { %2948 = vmatprep.subr.bf16.mxu1 %v3431_v25 }
  0x72   : > { %3281 = vmatmul.mubr.bf16.gmra.mrb[36].mxu0 %v3845_v54  ;;  %v3425_v54 = vld [vmem:[%s4786_s6 + $0x140] sm:$0xff]  }
  0x73   : > { %3284 = vmatprep.mubr.msk.bf16.mxu0 %vm3564_vm0, %v3563_v1  ;;  %3068 = vmatprep.subr.bf16.mxu0 %v3425_v54 }
  0x74   : > { %2949 = vmatpush3.bf16.msra.mxu1 %v3432_v11 }
  0x75   : > { %2950 = vmatprep.subr.bf16.mxu1 %v3435_v27 }
  0x78   : > { %2951 = vmatpush3.bf16.msra.mxu1 %v3436_v28 }
  0x79   : > { %2952 = vmatprep.subr.bf16.mxu1 %v3439_v31 }
  0x7a   : > { %3285 = vmatmul.mubr.bf16.gmra.mrb[40].mxu0 %v3856_v6  ;;  %v3426_v6 = vld [vmem:[%s4786_s6 + $0x100] sm:$0xff]  }
  0x7b   : > { %3288 = vmatprep.mubr.msk.bf16.mxu0 %vm3564_vm0, %v3563_v1  ;;  %3069 = vmatpush3.bf16.msra.mxu0 %v3426_v6 }
  0x7c   : > { %3070 = vmatprep.subr.bf16.mxu0 %v3429_v20  ;;  %2953 = vmatpush3.bf16.msra.mxu1 %v3440_v23 }
  0x7f   : > { %3071 = vmatpush3.bf16.msra.mxu0 %v3430_v21 }
  0x82   : > { %3289 = vmatmul.mubr.bf16.gmra.mrb[44].mxu0 %v3873_v24  ;;  %v3433_v24 = vld [vmem:[%s4786_s6 + $0x150] sm:$0xff]  }
  0x83   : > { %3292 = vmatprep.mubr.msk.bf16.mxu0 %vm3564_vm0, %v3563_v1  ;;  %3072 = vmatprep.subr.bf16.mxu0 %v3433_v24 }
  0x84   : > { %3073 = vmatpush3.bf16.msra.mxu0 %v3434_v26 }
  0x85   : > { %3074 = vmatprep.subr.bf16.mxu0 %v3437_v29 }
  0x88   : > { %3075 = vmatpush3.bf16.msra.mxu0 %v3438_v30 }
  0x89   : > { %3076 = vmatprep.subr.bf16.mxu0 %v3441_v36  ;;  %v3452_v36 = vld [vmem:[%s4786_s6 + $0x80] sm:$0xff]  }
  0x8a   : > { %3293 = vmatmul.mubr.bf16.gmra.mrb[48].mxu0 %v3886_v40  ;;  %v3443_v40 = vld [vmem:[%s4786_s6 + $0x78] sm:$0xff]  }
  0x8b   : > { %3296 = vmatprep.mubr.msk.bf16.mxu0 %vm3564_vm0, %v3563_v1  ;;  %2954 = vmatprep.subr.bf16.mxu1 %v3443_v40 }
  0x8c   : > { %3077 = vmatpush3.bf16.msra.mxu0 %v3442_v39  ;;  %2955 = vmatpush3.bf16.msra.mxu1 %v3444_v43 }
  0x8d   : > { %3078 = vmatprep.subr.bf16.mxu0 %v3445_v44  ;;  %3004 = vmatprep.subr.bf16.mxu1 %v3451_v22 }
  0x90   : > { %3079 = vmatpush3.bf16.msra.mxu0 %v3446_v45  ;;  %v3453_v45 = vld [vmem:[%s4786_s6 + $0xc8] sm:$0xff]  }
  0x91   : > { %3080 = vmatprep.subr.bf16.mxu0 %v3447_v46 }
  0x92   : > { %3297 = vmatmul.mubr.bf16.gmra.mrb[52].mxu0 %v3902_v52  ;;  %v4083_v52 = vld [vmem:[%s4784_s4] ss:$0 sm:$0xff] }
  0x93   : > { %3300 = vmatprep.mubr.msk.bf16.mxu0 %vm3564_vm0, %v3563_v1  ;;  %v3450_v1 = vld [vmem:[%s4786_s6 + $0x138] sm:$0xff]  }
  0x94   : > { %3081 = vmatpush3.bf16.msra.mxu0 %v3448_v47 }
  0x95   : > { %3082 = vmatprep.subr.bf16.mxu0 %v3449_v14 }
  0x98   : > { %3083 = vmatpush3.bf16.msra.mxu0 %v3450_v1 }
  0x99   : > { %3304 = vmatprep.subr.bf16.mxu0 %v4077_v51 }
  0x9a   : > { %3301 = vmatmul.mubr.bf16.gmra.mrb[56].mxu0 %v3927_v4  ;;  %v916_v37 = vpop.permute.xlu0 %915  ;;  %v924_v63 = vpop.permute.xlu1 %923 }
  0x9e   : > { %v920_v16 = vpop.permute.xlu0 %919  ;;  %v931_v48 = vpop.permute.xlu1 %930 }
  0xa2   : > { %v935_v26 = vpop.permute.xlu0 %934  ;;  %v939_v23 = vpop.permute.xlu1 %938 }
  0xfd   : > { %v663_v34 = vpop.f32.mrb[0].mxu0 }
  0xfe   : > { %v789_v53 = vmul.f32 %v4083_v52, %v663_v34  ;;  %v3246_v55 = vpop.f32.mrb[1].mxu0  ;;  %v3454_v34 = vld [vmem:[%s4786_s6 + $0x88] sm:$0xff]  }
  0xff   : > { %v666_v5 = vpop.f32.mrb[2].mxu0 }
 0x100   : > { %v826_v56 = vadd.f32 %v4088_v10, %v789_v53  ;;  %v790_v57 = vmul.f32 %v4083_v52, %v666_v5  ;;  %v3247_v59 = vpop.f32.mrb[3].mxu0 }
 0x102   : > { %v827_v8 = vadd.f32 %v4088_v10, %v790_v57  ;;  %v856_v60 = vmax.f32 %v826_v56, 0.0  ;;  %v3455_v56 = vld [vmem:[%s4786_s6 + $0xd0] sm:$0xff]  }
 0x104   : > { %v857_v15 = vmax.f32 %v827_v8, 0.0  ;;  %v1060_v38 = vmul.f32 %v916_v37, %v856_v60 }
 0x105   : > { %v671_v61 = vpop.f32.mrb[4].mxu0 }
 0x106   : > { %v1061_v3 = vmul.f32 %v920_v16, %v857_v15  ;;  %v791_v4 = vmul.f32 %v4083_v52, %v671_v61  ;;  %v3250_v7 = vpop.f32.mrb[5].mxu0  ;;  %v946_v61 = vpop.permute.xlu0 %945 }
 0x107   : > { %v674_v12 = vpop.f32.mrb[6].mxu0  ;;  %v3456_v7 = vld [vmem:[%s4786_s6 + $0x90] sm:$0xff]  }
 0x108   : > { %v1090_v35 = vpack.c.bf16 %v1061_v3, %v1060_v38  ;;  %v828_v41 = vadd.f32 %v4088_v10, %v791_v4  ;;  %v792_v58 = vmul.f32 %v4083_v52, %v674_v12  ;;  %v3251_v32 = vpop.f32.mrb[7].mxu0  ;;  %v950_v38 = vpop.permute.xlu1 %949 }
 0x10a   : > { %v858_v13 = vmax.f32 %v828_v41, 0.0  ;;  %v1114_v18 = vshll.u32 %v1090_v35, 16  ;;  %v829_v42 = vadd.f32 %v4088_v10, %v792_v58  ;;  %v1112_v17 = vshrl.u32 %v1090_v35, 16 }
 0x10b   : > { %v1232_v19 = vrot.slane %v1090_v35, 1 }
 0x10c   : > { %v1062_v49 = vmul.f32 %v924_v63, %v858_v13  ;;  %v1116_v9 = vrot.slane %v1114_v18, 1  ;;  %v859_v54 = vmax.f32 %v829_v42, 0.0  ;;  %v3457_v63 = vld [vmem:[%s4786_s6 + $0xd8] sm:$0xff]  }
 0x10d   : > { %v679_v0 = vpop.f32.mrb[8].mxu0 }
 0x10e   : > { %v1091_v62 = vpack.c.bf16 %v1062_v49, %v1062_v49  ;;  %v793_v2 = vmul.f32 %v4083_v52, %v679_v0  ;;  %v3254_v33 = vpop.f32.mrb[9].mxu0  ;;  %v1117_v27 = vor.u32 %v1116_v9, %v1112_v17  ;;  %v1063_v39 = vmul.f32 %v931_v48, %v859_v54  ;;  %v3459_v17 = vld [vmem:[%s4786_s6 + $0xe0] sm:$0xff]  }
 0x10f   : > { %v682_v6 = vpop.f32.mrb[10].mxu0 }
 0x110   : > { %v1119_v20 = vshll.u32 %v1091_v62, 16  ;;  %v1233_v21 = vrot.slane %v1091_v62, 1  ;;  %v830_v25 = vadd.f32 %v4088_v10, %v793_v2  ;;  %v794_v11 = vmul.f32 %v4083_v52, %v682_v6  ;;  %v3255_v24 = vpop.f32.mrb[11].mxu0  ;;  %v3458_v62 = vld [vmem:[%s4786_s6 + $0x98] sm:$0xff]   ;;  %v3466_v2 = vld [vmem:[%s4786_s6 + $0x208] sm:$0xff]  }
 0x111   : > { %v3467_v24 = vld [vmem:[%s4786_s6 + $0x210] sm:$0xff]  }
 0x112   : > { %v1121_v28 = vrot.slane %v1119_v20, 1  ;;  %v831_v29 = vadd.f32 %v4088_v10, %v794_v11  ;;  %v860_v30 = vmax.f32 %v830_v25, 0.0  ;;  %v4103_v31 = vsel %vm1231_vm13, %v1232_v19, %v1233_v21  ;;  %v954_v19 = vpop.permute.xlu0 %953  ;;  %v3460_v11 = vld [vmem:[%s4786_s6 + $0xa0] sm:$0xff]  }
 0x114   : > { %v1064_v40 = vmul.f32 %v935_v26, %v860_v30  ;;  %v861_v43 = vmax.f32 %v831_v29, 0.0  ;;  %v1122_v44 = vsel %vm1110_vm14, %v1117_v27, %v1121_v28 }
 0x115   : > { %v687_v46 = vpop.f32.mrb[12].mxu0  ;;  %1910 = vmatprep.mubr.bf16.mxu1 %v1122_v44 }
 0x116   : > { %v4112_v47 = vpack.c.bf16 %v1064_v40, %v1063_v39  ;;  %v1065_v14 = vmul.f32 %v939_v23, %v861_v43  ;;  %v795_v1 = vmul.f32 %v4083_v52, %v687_v46  ;;  %v3258_v22 = vpop.f32.mrb[13].mxu0  ;;  %1911 = vmatmul.mubr.bf16.vlgmr.msra.gmra.mrb[0].mxu1 %v1090_v35 }
 0x117   : > { %v690_v50 = vpop.f32.mrb[14].mxu0  ;;  %3005 = vmatpush3.bf16.msra.mxu1 %v3452_v36  ;;  %v961_v36 = vpop.permute.xlu1 %960 }
 0x118   : > { %v1093_v37 = vpack.c.bf16 %v1065_v14, %v1065_v14  ;;  %v832_v53 = vadd.f32 %v4088_v10, %v795_v1  ;;  %v796_v55 = vmul.f32 %v4083_v52, %v690_v50  ;;  %v3259_v5 = vpop.f32.mrb[15].mxu0  ;;  %3006 = vmatprep.subr.bf16.mxu1 %v3453_v45  ;;  %v1235_v57 = vrot.slane %v4112_v47, 1  ;;  %v3462_v45 = vld [vmem:[%s4786_s6 + $0xa8] sm:$0xff]  }
 0x119   : > { %v1126_v59 = vshll.u32 %v4112_v47, 16  ;;  %v1124_v3 = vshrl.u32 %v4112_v47, 16 }
 0x11a   : > { %v1131_v8 = vshll.u32 %v1093_v37, 16  ;;  %v1236_v60 = vrot.slane %v1093_v37, 1  ;;  %v833_v16 = vadd.f32 %v4088_v10, %v796_v55  ;;  %v862_v15 = vmax.f32 %v832_v53, 0.0  ;;  %v3470_v37 = vld [vmem:[%s4786_s6 + $0x218] sm:$0xff]   ;;  %v965_v53 = vpop.permute.xlu0 %964 }
 0x11b   : > { %v1128_v4 = vrot.slane %v1126_v59, 1  ;;  %3007 = vmatpush3.bf16.msra.mxu1 %v3454_v34  ;;  %v3464_v34 = vld [vmem:[%s4786_s6 + $0xf0] sm:$0xff]  }
 0x11c   : > { %v1133_v12 = vrot.slane %v1131_v8, 1  ;;  %v863_v35 = vmax.f32 %v833_v16, 0.0  ;;  %v4131_v41 = vsel %vm1231_vm13, %v1235_v57, %v1236_v60  ;;  %3008 = vmatprep.subr.bf16.mxu1 %v3455_v56  ;;  %v1066_v13 = vmul.f32 %v946_v61, %v862_v15  ;;  %v969_v8 = vpop.permute.xlu1 %968  ;;  %v3465_v60 = vld [vmem:[%s4786_s6 + $0xb0] sm:$0xff]   ;;  %v3471_v16 = vld [vmem:[%s4786_s6 + $0x220] sm:$0xff]  }
 0x11d   : > { %v695_v58 = vpop.f32.mrb[16].mxu0  ;;  %2104 = vmatprep.mubr.bf16.mxu0 %v4131_v41  ;;  %v1129_v32 = vor.u32 %v1128_v4, %v1124_v3  ;;  %v3468_v4 = vld [vmem:[%s4786_s6 + $0xf8] sm:$0xff]  }
 0x11e   : > { %v1067_v18 = vmul.f32 %v950_v38, %v863_v35  ;;  %v797_v42 = vmul.f32 %v4083_v52, %v695_v58  ;;  %v3262_v49 = vpop.f32.mrb[17].mxu0 }
 0x11f   : > { %v698_v0 = vpop.f32.mrb[18].mxu0  ;;  %v1134_v9 = vsel %vm1110_vm14, %v1129_v32, %v1133_v12  ;;  %3009 = vmatpush3.bf16.msra.mxu1 %v3456_v7 }
 0x120   : > { %v4145_v33 = vpack.c.bf16 %v1067_v18, %v1066_v13  ;;  %v834_v48 = vadd.f32 %v4088_v10, %v797_v42  ;;  %v798_v54 = vmul.f32 %v4083_v52, %v698_v0  ;;  %1918 = vmatprep.mubr.bf16.mxu1 %v1134_v9  ;;  %2105 = vmatmul.mubr.bf16.vlgmr.msra.gmra.mrb[60].mxu0 %v1134_v9  ;;  %v3263_v6 = vpop.f32.mrb[19].mxu0  ;;  %v3469_v13 = vld [vmem:[%s4786_s6 + $0xb8] sm:$0xff]   ;;  %v3474_v18 = vld [vmem:[%s4786_s6 + $0x228] sm:$0xff]  }
 0x121   : > { %1919 = vmatmul.mubr.bf16.gmra.mrb[4].mxu1 %v4112_v47  ;;  %3010 = vmatprep.subr.bf16.mxu1 %v3457_v63 }
 0x122   : > { %v864_v20 = vmax.f32 %v834_v48, 0.0  ;;  %3305 = vmatpush3.bf16.msra.mxu0 %v4077_v51  ;;  %v835_v21 = vadd.f32 %v4088_v10, %v798_v54  ;;  %v1138_v25 = vshll.u32 %v4145_v33, 16  ;;  %v3461_v51 = vld [vmem:[%s4786_s6 + $0xe8] sm:$0xff]   ;;  %v1238_v43 = vrot.slane %v4145_v33, 1 }
 0x123   : > { %3011 = vmatpush3.bf16.msra.mxu1 %v3458_v62  ;;  %3306 = vmatprep.subr.bf16.mxu0 %v3466_v2  ;;  %v1136_v44 = vshrl.u32 %v4145_v33, 16  ;;  %v3472_v62 = vld [vmem:[%s4786_s6 + $0x1c0] sm:$0xff]  }
 0x124   : > { %v1068_v26 = vmul.f32 %v954_v19, %v864_v20  ;;  %3012 = vmatprep.subr.bf16.mxu1 %v3459_v17  ;;  %v1140_v28 = vrot.slane %v1138_v25, 1  ;;  %v865_v39 = vmax.f32 %v835_v21, 0.0  ;;  %v976_v20 = vpop.permute.xlu0 %975  ;;  %v980_v21 = vpop.permute.xlu1 %979 }
 0x125   : > { %v703_v27 = vpop.f32.mrb[20].mxu0 }
 0x126   : > { %v1095_v29 = vpack.c.bf16 %v1068_v26, %v1068_v26  ;;  %v799_v30 = vmul.f32 %v4083_v52, %v703_v27  ;;  %v3266_v23 = vpop.f32.mrb[21].mxu0  ;;  %3307 = vmatpush3.bf16.msra.mxu0 %v3466_v2  ;;  %v1141_v55 = vor.u32 %v1140_v28, %v1136_v44  ;;  %v1069_v15 = vmul.f32 %v961_v36, %v865_v39  ;;  %v3478_v44 = vld [vmem:[%s4786_s6 + $0x238] sm:$0xff]  }
 0x127   : > { %v706_v40 = vpop.f32.mrb[22].mxu0  ;;  %3013 = vmatpush3.bf16.msra.mxu1 %v3460_v11  ;;  %3308 = vmatprep.subr.bf16.mxu0 %v3467_v24 }
 0x128   : > { %v1143_v46 = vshll.u32 %v1095_v29, 16  ;;  %v1239_v14 = vrot.slane %v1095_v29, 1  ;;  %v836_v1 = vadd.f32 %v4088_v10, %v799_v30  ;;  %v800_v22 = vmul.f32 %v4083_v52, %v706_v40  ;;  %v3267_v50 = vpop.f32.mrb[23].mxu0  ;;  %3014 = vmatprep.subr.bf16.mxu1 %v3461_v51 }
 0x12a   : > { %v1145_v5 = vrot.slane %v1143_v46, 1  ;;  %v837_v56 = vadd.f32 %v4088_v10, %v800_v22  ;;  %v866_v57 = vmax.f32 %v836_v1, 0.0  ;;  %v4181_v59 = vsel %vm1231_vm13, %v1238_v43, %v1239_v14  ;;  %3309 = vmatpush3.bf16.msra.mxu0 %v3467_v24  ;;  %v3475_v24 = vld [vmem:[%s4786_s6 + $0x230] sm:$0xff]   ;;  %v984_v22 = vpop.permute.xlu0 %983 }
 0x12b   : > { %2112 = vmatprep.mubr.bf16.mxu0 %v4181_v59  ;;  %3015 = vmatpush3.bf16.msra.mxu1 %v3462_v45 }
 0x12c   : > { %v1070_v61 = vmul.f32 %v965_v53, %v866_v57  ;;  %v867_v38 = vmax.f32 %v837_v56, 0.0  ;;  %v4191_v3 = vsel %vm1110_vm14, %v1141_v55, %v1145_v5  ;;  %3016 = vmatprep.subr.bf16.mxu1 %v3464_v34  ;;  %3310 = vmatprep.subr.bf16.mxu0 %v3470_v37 }
 0x12d   : > { %v711_v7 = vpop.f32.mrb[24].mxu0  ;;  %1926 = vmatprep.mubr.bf16.mxu1 %v4191_v3  ;;  %2113 = vmatmul.mubr.bf16.gmra.mrb[64].mxu0 %v4191_v3 }
 0x12e   : > { %v4198_v12 = vpack.c.bf16 %v1070_v61, %v1069_v15  ;;  %v1071_v35 = vmul.f32 %v969_v8, %v867_v38  ;;  %v801_v58 = vmul.f32 %v4083_v52, %v711_v7  ;;  %v3270_v32 = vpop.f32.mrb[25].mxu0  ;;  %1927 = vmatmul.mubr.bf16.gmra.mrb[8].mxu1 %v4145_v33  ;;  %3311 = vmatpush3.bf16.msra.mxu0 %v3470_v37 }
 0x12f   : > { %v714_v63 = vpop.f32.mrb[26].mxu0  ;;  %3017 = vmatpush3.bf16.msra.mxu1 %v3465_v60  ;;  %3312 = vmatprep.subr.bf16.mxu0 %v3471_v16  ;;  %v991_v60 = vpop.permute.xlu1 %990 }
 0x130   : > { %v1097_v42 = vpack.c.bf16 %v1071_v35, %v1071_v35  ;;  %v838_v49 = vadd.f32 %v4088_v10, %v801_v58  ;;  %v802_v0 = vmul.f32 %v4083_v52, %v714_v63  ;;  %v3271_v9 = vpop.f32.mrb[27].mxu0  ;;  %3018 = vmatprep.subr.bf16.mxu1 %v3468_v4  ;;  %v1241_v2 = vrot.slane %v4198_v12, 1  ;;  %v995_v63 = vpop.permute.xlu0 %994 }
 0x131   : > { %v1150_v48 = vshll.u32 %v4198_v12, 16  ;;  %v1148_v25 = vshrl.u32 %v4198_v12, 16 }
 0x132   : > { %v1155_v54 = vshll.u32 %v1097_v42, 16  ;;  %v1242_v6 = vrot.slane %v1097_v42, 1  ;;  %v839_v17 = vadd.f32 %v4088_v10, %v802_v0  ;;  %v868_v19 = vmax.f32 %v838_v49, 0.0  ;;  %3313 = vmatpush3.bf16.msra.mxu0 %v3471_v16 }
 0x133   : > { %v1152_v11 = vrot.slane %v1150_v48, 1  ;;  %3019 = vmatpush3.bf16.msra.mxu1 %v3469_v13  ;;  %3314 = vmatprep.subr.bf16.mxu0 %v3474_v18  ;;  %v999_v9 = vpop.permute.xlu1 %998 }
 0x134   : > { %v1157_v26 = vrot.slane %v1155_v54, 1  ;;  %v869_v51 = vmax.f32 %v839_v17, 0.0  ;;  %v4221_v27 = vsel %vm1231_vm13, %v1241_v2, %v1242_v6  ;;  %3132 = vmatprep.subr.bf16.mxu1 %v3472_v62  ;;  %v1072_v30 = vmul.f32 %v976_v20, %v868_v19 }
 0x135   : > { %v719_v28 = vpop.f32.mrb[28].mxu0  ;;  %2120 = vmatprep.mubr.bf16.mxu0 %v4221_v27  ;;  %v1153_v29 = vor.u32 %v1152_v11, %v1148_v25 }
 0x136   : > { %v1073_v23 = vmul.f32 %v980_v21, %v869_v51  ;;  %v803_v36 = vmul.f32 %v4083_v52, %v719_v28  ;;  %v3274_v39 = vpop.f32.mrb[29].mxu0  ;;  %3315 = vmatpush3.bf16.msra.mxu0 %v3474_v18 }
 0x137   : > { %v722_v40 = vpop.f32.mrb[30].mxu0  ;;  %v4226_v43 = vsel %vm1110_vm14, %v1153_v29, %v1157_v26  ;;  %3316 = vmatprep.subr.bf16.mxu0 %v3475_v24 }
 0x138   : > { %v4231_v45 = vpack.c.bf16 %v1073_v23, %v1072_v30  ;;  %v840_v46 = vadd.f32 %v4088_v10, %v803_v36  ;;  %v804_v14 = vmul.f32 %v4083_v52, %v722_v40  ;;  %1934 = vmatprep.mubr.bf16.mxu1 %v4226_v43  ;;  %2121 = vmatmul.mubr.bf16.gmra.mrb[68].mxu0 %v4226_v43  ;;  %v3275_v1 = vpop.f32.mrb[31].mxu0  ;;  %v1006_v40 = vpop.permute.xlu0 %1005 }
 0x139   : > { %1935 = vmatmul.mubr.bf16.gmra.mrb[12].mxu1 %v4198_v12 }
 0x13a   : > { %v870_v50 = vmax.f32 %v840_v46, 0.0  ;;  %3317 = vmatpush3.bf16.msra.mxu0 %v3475_v24  ;;  %v841_v34 = vadd.f32 %v4088_v10, %v804_v14  ;;  %v1162_v37 = vshll.u32 %v4231_v45, 16  ;;  %v1244_v61 = vrot.slane %v4231_v45, 1 }
 0x13b   : > { %3318 = vmatprep.subr.bf16.mxu0 %v3478_v44  ;;  %v1160_v38 = vshrl.u32 %v4231_v45, 16 }
 0x13c   : > { %v1074_v53 = vmul.f32 %v984_v22, %v870_v50  ;;  %v1164_v5 = vrot.slane %v1162_v37, 1  ;;  %v871_v16 = vmax.f32 %v841_v34, 0.0 }
 0x13d   : > { %v727_v55 = vpop.f32.mrb[32].mxu0 }
 0x13e   : > { %v1099_v56 = vpack.c.bf16 %v1074_v53, %v1074_v53  ;;  %v805_v57 = vmul.f32 %v4083_v52, %v727_v55  ;;  %v3278_v8 = vpop.f32.mrb[33].mxu0  ;;  %3319 = vmatpush3.bf16.msra.mxu0 %v3478_v44  ;;  %v1165_v13 = vor.u32 %v1164_v5, %v1160_v38  ;;  %v1075_v62 = vmul.f32 %v991_v60, %v871_v16  ;;  %v1010_v44 = vpop.permute.xlu1 %1009 }
 0x13f   : > { %v730_v15 = vpop.f32.mrb[34].mxu0  ;;  %v1014_v38 = vpop.permute.xlu0 %1013 }
 0x140   : > { %v1167_v4 = vshll.u32 %v1099_v56, 16  ;;  %v1245_v7 = vrot.slane %v1099_v56, 1  ;;  %v842_v35 = vadd.f32 %v4088_v10, %v805_v57  ;;  %v806_v58 = vmul.f32 %v4083_v52, %v730_v15  ;;  %v3279_v32 = vpop.f32.mrb[35].mxu0 }
 0x142   : > { %v1169_v18 = vrot.slane %v1167_v4, 1  ;;  %v843_v42 = vadd.f32 %v4088_v10, %v806_v58  ;;  %v872_v49 = vmax.f32 %v842_v35, 0.0  ;;  %v4247_v0 = vsel %vm1231_vm13, %v1244_v61, %v1245_v7 }
 0x143   : > { %2128 = vmatprep.mubr.bf16.mxu0 %v4247_v0 }
 0x144   : > { %v1076_v2 = vmul.f32 %v995_v63, %v872_v49  ;;  %v873_v48 = vmax.f32 %v843_v42, 0.0  ;;  %v4251_v54 = vsel %vm1110_vm14, %v1165_v13, %v1169_v18  ;;  %v1021_v49 = vpop.permute.xlu1 %1020 }
 0x145   : > { %v735_v6 = vpop.f32.mrb[36].mxu0  ;;  %1942 = vmatprep.mubr.bf16.mxu1 %v4251_v54  ;;  %2129 = vmatmul.mubr.bf16.gmra.mrb[72].mxu0 %v4251_v54 }
 0x146   : > { %v4255_v17 = vpack.c.bf16 %v1076_v2, %v1075_v62  ;;  %v1077_v19 = vmul.f32 %v999_v9, %v873_v48  ;;  %v807_v20 = vmul.f32 %v4083_v52, %v735_v6  ;;  %v3282_v21 = vpop.f32.mrb[37].mxu0  ;;  %1943 = vmatmul.mubr.bf16.gmra.mrb[16].mxu1 %v4231_v45 }
 0x147   : > { %v738_v25 = vpop.f32.mrb[38].mxu0 }
 0x148   : > { %v1101_v11 = vpack.c.bf16 %v1077_v19, %v1077_v19  ;;  %v844_v24 = vadd.f32 %v4088_v10, %v807_v20  ;;  %v808_v26 = vmul.f32 %v4083_v52, %v738_v25  ;;  %v3283_v51 = vpop.f32.mrb[39].mxu0  ;;  %v1247_v28 = vrot.slane %v4255_v17, 1 }
 0x149   : > { %v1174_v29 = vshll.u32 %v4255_v17, 16  ;;  %v1172_v46 = vshrl.u32 %v4255_v17, 16 }
 0x14a   : > { %v1179_v30 = vshll.u32 %v1101_v11, 16  ;;  %v1248_v23 = vrot.slane %v1101_v11, 1  ;;  %v845_v36 = vadd.f32 %v4088_v10, %v808_v26  ;;  %v874_v39 = vmax.f32 %v844_v24, 0.0  ;;  %v1025_v11 = vpop.permute.xlu0 %1024 }
 0x14b   : > { %v1176_v14 = vrot.slane %v1174_v29, 1 }
 0x14c   : > { %v1181_v1 = vrot.slane %v1179_v30, 1  ;;  %v875_v22 = vmax.f32 %v845_v36, 0.0  ;;  %v4266_v50 = vsel %vm1231_vm13, %v1247_v28, %v1248_v23  ;;  %v1078_v53 = vmul.f32 %v1006_v40, %v874_v39  ;;  %v1029_v30 = vpop.permute.xlu1 %1028 }
 0x14d   : > { %v743_v34 = vpop.f32.mrb[40].mxu0  ;;  %2136 = vmatprep.mubr.bf16.mxu0 %v4266_v50  ;;  %v1177_v37 = vor.u32 %v1176_v14, %v1172_v46 }
 0x14e   : > { %v1079_v55 = vmul.f32 %v1010_v44, %v875_v22  ;;  %v809_v5 = vmul.f32 %v4083_v52, %v743_v34  ;;  %v3286_v56 = vpop.f32.mrb[41].mxu0 }
 0x14f   : > { %v746_v57 = vpop.f32.mrb[42].mxu0  ;;  %v4271_v8 = vsel %vm1110_vm14, %v1177_v37, %v1181_v1 }
 0x150   : > { %v4273_v60 = vpack.c.bf16 %v1079_v55, %v1078_v53  ;;  %v846_v16 = vadd.f32 %v4088_v10, %v809_v5  ;;  %v810_v15 = vmul.f32 %v4083_v52, %v746_v57  ;;  %1950 = vmatprep.mubr.bf16.mxu1 %v4271_v8  ;;  %2137 = vmatmul.mubr.bf16.gmra.mrb[76].mxu0 %v4271_v8  ;;  %v3287_v61 = vpop.f32.mrb[43].mxu0 }
 0x151   : > { %1951 = vmatmul.mubr.bf16.gmra.mrb[20].mxu1 %v4255_v17 }
 0x152   : > { %v876_v4 = vmax.f32 %v846_v16, 0.0  ;;  %v847_v7 = vadd.f32 %v4088_v10, %v810_v15  ;;  %v1186_v35 = vshll.u32 %v4273_v60, 16  ;;  %v1250_v2 = vrot.slane %v4273_v60, 1 }
 0x153   : > { %v1184_v48 = vshrl.u32 %v4273_v60, 16 }
 0x154   : > { %v1080_v58 = vmul.f32 %v1014_v38, %v876_v4  ;;  %v1188_v63 = vrot.slane %v1186_v35, 1  ;;  %v877_v9 = vmax.f32 %v847_v7, 0.0  ;;  %v1036_v4 = vpop.permute.xlu0 %1035 }
 0x155   : > { %v751_v32 = vpop.f32.mrb[44].mxu0 }
 0x156   : > { %v1103_v13 = vpack.c.bf16 %v1080_v58, %v1080_v58  ;;  %v811_v18 = vmul.f32 %v4083_v52, %v751_v32  ;;  %v3290_v42 = vpop.f32.mrb[45].mxu0  ;;  %v1189_v24 = vor.u32 %v1188_v63, %v1184_v48  ;;  %v1081_v23 = vmul.f32 %v1021_v49, %v877_v9  ;;  %v1040_v58 = vpop.permute.xlu1 %1039 }
 0x157   : > { %v754_v62 = vpop.f32.mrb[46].mxu0 }
 0x158   : > { %v1191_v6 = vshll.u32 %v1103_v13, 16  ;;  %v1251_v19 = vrot.slane %v1103_v13, 1  ;;  %v848_v20 = vadd.f32 %v4088_v10, %v811_v18  ;;  %v812_v21 = vmul.f32 %v4083_v52, %v754_v62  ;;  %v3291_v25 = vpop.f32.mrb[47].mxu0 }
 0x15a   : > { %v1193_v26 = vrot.slane %v1191_v6, 1  ;;  %v849_v51 = vadd.f32 %v4088_v10, %v812_v21  ;;  %v878_v28 = vmax.f32 %v848_v20, 0.0  ;;  %v4289_v29 = vsel %vm1231_vm13, %v1250_v2, %v1251_v19 }
 0x15b   : > { %2144 = vmatprep.mubr.bf16.mxu0 %v4289_v29 }
 0x15c   : > { %v1082_v36 = vmul.f32 %v1025_v11, %v878_v28  ;;  %v879_v39 = vmax.f32 %v849_v51, 0.0  ;;  %v4293_v40 = vsel %vm1110_vm14, %v1189_v24, %v1193_v26  ;;  %v1044_v11 = vpop.permute.xlu0 %1043 }
 0x15d   : > { %1958 = vmatprep.mubr.bf16.mxu1 %v4293_v40  ;;  %2145 = vmatmul.mubr.bf16.gmra.mrb[80].mxu0 %v4293_v40  ;;  %v759_v44 = vpop.f32.mrb[48].mxu0 }
 0x15e   : > { %v4297_v46 = vpack.c.bf16 %v1082_v36, %v1081_v23  ;;  %v1083_v14 = vmul.f32 %v1029_v30, %v879_v39  ;;  %1959 = vmatmul.mubr.bf16.gmra.mrb[24].mxu1 %v4273_v60  ;;  %v813_v1 = vmul.f32 %v4083_v52, %v759_v44  ;;  %v3294_v22 = vpop.f32.mrb[49].mxu0  ;;  %v3473_v44 = vld [vmem:[%s4786_s6 + $0x180] sm:$0xff]  }
 0x15f   : > { %v762_v34 = vpop.f32.mrb[50].mxu0 }
 0x160   : > { %v1105_v37 = vpack.c.bf16 %v1083_v14, %v1083_v14  ;;  %v850_v53 = vadd.f32 %v4088_v10, %v813_v1  ;;  %v814_v55 = vmul.f32 %v4083_v52, %v762_v34  ;;  %v3295_v5 = vpop.f32.mrb[51].mxu0  ;;  %v1253_v56 = vrot.slane %v4297_v46, 1  ;;  %v3476_v34 = vld [vmem:[%s4786_s6 + $0x1c8] sm:$0xff]  }
 0x161   : > { %v1198_v57 = vshll.u32 %v4297_v46, 16  ;;  %v1196_v7 = vshrl.u32 %v4297_v46, 16 }
 0x162   : > { %v1203_v16 = vshll.u32 %v1105_v37, 16  ;;  %v1254_v15 = vrot.slane %v1105_v37, 1  ;;  %v851_v61 = vadd.f32 %v4088_v10, %v814_v55  ;;  %v880_v38 = vmax.f32 %v850_v53, 0.0 }
 0x163   : > { %v1200_v35 = vrot.slane %v1198_v57, 1 }
 0x164   : > { %v1205_v32 = vrot.slane %v1203_v16, 1  ;;  %v4308_v63 = vsel %vm1231_vm13, %v1253_v56, %v1254_v15  ;;  %v1084_v13 = vmul.f32 %v1036_v4, %v880_v38  ;;  %v881_v18 = vmax.f32 %v851_v61, 0.0  ;;  %v1051_v16 = vpop.permute.xlu1 %1050  ;;  %v1055_v15 = vpop.permute.xlu0 %1054  ;;  %v3477_v4 = vld [vmem:[%s4786_s6 + $0x188] sm:$0xff]  }
 0x165   : > { %v767_v42 = vpop.f32.mrb[52].mxu0  ;;  %2152 = vmatprep.mubr.bf16.mxu0 %v4308_v63  ;;  %v1201_v49 = vor.u32 %v1200_v35, %v1196_v7 }
 0x166   : > { %v815_v9 = vmul.f32 %v4083_v52, %v767_v42  ;;  %v1085_v62 = vmul.f32 %v1040_v58, %v881_v18  ;;  %v3298_v2 = vpop.f32.mrb[53].mxu0  ;;  %v3481_v42 = vld [vmem:[%s4786_s6 + $0x1d8] sm:$0xff]  }
 0x167   : > { %v4313_v48 = vsel %vm1110_vm14, %v1201_v49, %v1205_v32  ;;  %v770_v6 = vpop.f32.mrb[54].mxu0  ;;  %v3482_v49 = vld [vmem:[%s4786_s6 + $0x198] sm:$0xff]  }
 0x168   : > { %v852_v19 = vadd.f32 %v4088_v10, %v815_v9  ;;  %1966 = vmatprep.mubr.bf16.mxu1 %v4313_v48  ;;  %2153 = vmatmul.mubr.bf16.gmra.mrb[84].mxu0 %v4313_v48  ;;  %v4318_v20 = vpack.c.bf16 %v1085_v62, %v1084_v13  ;;  %v816_v21 = vmul.f32 %v4083_v52, %v770_v6  ;;  %v3299_v25 = vpop.f32.mrb[55].mxu0  ;;  %v3480_v13 = vld [vmem:[%s4786_s6 + $0x190] sm:$0xff]   ;;  %v3483_v62 = vld [vmem:[%s4786_s6 + $0x1e0] sm:$0xff]   ;;  %v3486_v6 = vld [vmem:[%s4786_s6 + $0x1a8] sm:$0xff]  }
 0x169   : > { %1967 = vmatmul.mubr.bf16.gmra.mrb[28].mxu1 %v4297_v46 }
 0x16a   : > { %2007 = vmatprep.mubr.bf16.mxu1 %v4112_v47  ;;  %v882_v24 = vmax.f32 %v852_v19, 0.0  ;;  %v1267_v26 = vshll.u32 %v4318_v20, 16  ;;  %v853_v51 = vadd.f32 %v4088_v10, %v816_v21  ;;  %v1265_v30 = vshrl.u32 %v4318_v20, 16  ;;  %v1059_v21 = vpop.permute.xlu1 %1058 }
 0x16b   : > { %v1279_v14 = vrot.slane %v4318_v20, 1 }
 0x16c   : > { %v1086_v28 = vmul.f32 %v1044_v11, %v882_v24  ;;  %v1269_v23 = vrot.slane %v1267_v26, 1  ;;  %v883_v22 = vmax.f32 %v853_v51, 0.0  ;;  %v3489_v11 = vld [vmem:[%s4786_s6 + $0x1f8] sm:$0xff]  }
 0x16d   : > { %v775_v36 = vpop.f32.mrb[56].mxu0  ;;  %v3490_v24 = vld [vmem:[%s4786_s6 + $0x1b8] sm:$0xff]  }
 0x16e   : > { %v1107_v39 = vpack.c.bf16 %v1086_v28, %v1086_v28  ;;  %v817_v1 = vmul.f32 %v4083_v52, %v775_v36  ;;  %v3302_v47 = vpop.f32.mrb[57].mxu0  ;;  %v1270_v5 = vor.u32 %v1269_v23, %v1265_v30  ;;  %v1087_v7 = vmul.f32 %v1051_v16, %v883_v22  ;;  %v3491_v22 = vld [vmem:[%s4789_s9] sm:$0xff]  }
 0x16f   : > { %v778_v37 = vpop.f32.mrb[58].mxu0 }
 0x170   : > { %v1272_v53 = vshll.u32 %v1107_v39, 16  ;;  %v1280_v55 = vrot.slane %v1107_v39, 1  ;;  %v854_v56 = vadd.f32 %v4088_v10, %v817_v1  ;;  %v3303_v57 = vpop.f32.mrb[59].mxu0  ;;  %v818_v9 = vmul.f32 %v4083_v52, %v778_v37  ;;  %v3485_v52 = vld [vmem:[%s4786_s6 + $0x1e8] sm:$0xff]  }
 0x171   : > { %2008 = vmatmul.mubr.bf16.vlgmr.msra.gmra.mrb[32].mxu1 %v4103_v31  ;;  %v3479_v31 = vld [vmem:[%s4786_s6 + $0x1d0] sm:$0xff]   ;;  %v3492_v37 = vld [vmem:[%s4789_s9 + $0x8] sm:$0xff]  }
 0x172   : > { %v1274_v61 = vrot.slane %v1272_v53, 1  ;;  %3133 = vmatpush3.bf16.msra.mxu1 %v3473_v44  ;;  %2015 = vmatprep.mubr.bf16.mxu1 %v4145_v33  ;;  %v1281_v38 = vsel %vm1231_vm13, %v1279_v14, %v1280_v55  ;;  %v884_v35 = vmax.f32 %v854_v56, 0.0  ;;  %v855_v2 = vadd.f32 %v4088_v10, %v818_v9  ;;  %v3487_v10 = vld [vmem:[%s4786_s6 + $0x1f0] sm:$0xff]  }
 0x173   : > { %2160 = vmatprep.mubr.bf16.mxu0 %v1281_v38  ;;  %3134 = vmatprep.subr.bf16.mxu1 %v3476_v34 }
 0x174   : > { %v4345_v58 = vsel %vm1110_vm14, %v1270_v5, %v1274_v61  ;;  %v1088_v32 = vmul.f32 %v1055_v15, %v884_v35  ;;  %v885_v19 = vmax.f32 %v855_v2, 0.0 }
 0x175   : > { %2161 = vmatmul.mubr.bf16.gmra.mrb[88].mxu0 %v4345_v58 }
 0x176   : > { %3320 = vmatprep.mubr.bf16.mxu0 %v4181_v59  ;;  %3135 = vmatpush3.bf16.msra.mxu1 %v3477_v4  ;;  %v4352_v18 = vpack.c.bf16 %v1088_v32, %v1087_v7  ;;  %v1089_v25 = vmul.f32 %v1059_v21, %v885_v19  ;;  %v3493_v7 = vld [vmem:[%s4789_s9 + $0x10] sm:$0xff]  }
 0x177   : > { %3136 = vmatprep.subr.bf16.mxu1 %v3479_v31  ;;  %v3494_v31 = vld [vmem:[%s4789_s9 + $0x18] sm:$0xff]   ;;  %v3497_v21 = vld [vmem:[%s4789_s9 + $0x30] sm:$0xff]  }
 0x178   : > { %v1109_v26 = vpack.c.bf16 %v1089_v25, %v1089_v25  ;;  %v1298_v28 = vrot.slane %v4352_v18, 1  ;;  %v3498_v25 = vld [vmem:[%s4789_s9 + $0x38] sm:$0xff]  }
 0x179   : > { %2016 = vmatmul.mubr.bf16.gmra.mrb[36].mxu1 %v4131_v41  ;;  %v3484_v41 = vld [vmem:[%s4786_s6 + $0x1a0] sm:$0xff]  }
 0x17a   : > { %2023 = vmatprep.mubr.bf16.mxu1 %v4198_v12  ;;  %3137 = vmatpush3.bf16.msra.mxu1 %v3480_v13  ;;  %v1299_v51 = vrot.slane %v1109_v26, 1 }
 0x17b   : > { %3138 = vmatprep.subr.bf16.mxu1 %v3481_v42 }
 0x17d   : > { %3321 = vmatmul.mubr.bf16.vlgmr.msra.gmra.mrb[92].mxu0 %v4221_v27 }
 0x17e   : > { %3324 = vmatprep.mubr.bf16.mxu0 %v4247_v0  ;;  %3139 = vmatpush3.bf16.msra.mxu1 %v3482_v49 }
 0x17f   : > { %3140 = vmatprep.subr.bf16.mxu1 %v3483_v62 }
 0x181   : > { %2024 = vmatmul.mubr.bf16.gmra.mrb[40].mxu1 %v4181_v59  ;;  %v3488_v59 = vld [vmem:[%s4786_s6 + $0x1b0] sm:$0xff]  }
 0x182   : > { %2031 = vmatprep.mubr.bf16.mxu1 %v4231_v45  ;;  %3141 = vmatpush3.bf16.msra.mxu1 %v3484_v41 }
 0x183   : > { %3142 = vmatprep.subr.bf16.mxu1 %v3485_v52 }
 0x185   : > { %3325 = vmatmul.mubr.bf16.gmra.mrb[96].mxu0 %v4266_v50 }
 0x186   : > { %3328 = vmatprep.mubr.bf16.mxu0 %v4289_v29  ;;  %3143 = vmatpush3.bf16.msra.mxu1 %v3486_v6 }
 0x187   : > { %3144 = vmatprep.subr.bf16.mxu1 %v3487_v10  ;;  %v3496_v10 = vld [vmem:[%s4789_s9 + $0x28] sm:$0xff]  }
 0x189   : > { %2032 = vmatmul.mubr.bf16.gmra.mrb[44].mxu1 %v4221_v27  ;;  %v1300_v27 = vsel %vm1231_vm13, %v1298_v28, %v1299_v51 }
 0x18a   : > { %2039 = vmatprep.mubr.bf16.mxu1 %v4255_v17  ;;  %3145 = vmatpush3.bf16.msra.mxu1 %v3488_v59 }
 0x18b   : > { %3146 = vmatprep.subr.bf16.mxu1 %v3489_v11 }
 0x18d   : > { %3329 = vmatmul.mubr.bf16.gmra.mrb[100].mxu0 %v4308_v63 }
 0x18e   : > { %3147 = vmatpush3.bf16.msra.mxu1 %v3490_v24  ;;  %3332 = vmatprep.mubr.bf16.mxu0 %v1281_v38 }
 0x18f   : > { %3336 = vmatprep.subr.bf16.mxu1 %v3491_v22 }
 0x191   : > { %2040 = vmatmul.mubr.bf16.gmra.mrb[48].mxu1 %v4247_v0 }
 0x192   : > { %2047 = vmatprep.mubr.bf16.mxu1 %v4273_v60 }
 0x195   : > { %3333 = vmatmul.mubr.bf16.gmra.mrb[104].mxu0 %v1300_v27 }
 0x199   : > { %2048 = vmatmul.mubr.bf16.gmra.mrb[52].mxu1 %v4266_v50 }
 0x19a   : > { %2055 = vmatprep.mubr.bf16.mxu1 %v4297_v46 }
 0x1a1   : > { %2056 = vmatmul.mubr.bf16.gmra.mrb[56].mxu1 %v4289_v29 }
 0x1a2   : > { %2063 = vmatprep.mubr.bf16.mxu1 %v4318_v20 }
 0x1a9   : > { %2064 = vmatmul.mubr.bf16.gmra.mrb[60].mxu1 %v4308_v63 }
 0x1aa   : > { %2201 = vmatprep.mubr.bf16.mxu1 %v4191_v3  ;;  %v1291_v3 = vshll.u32 %v1109_v26, 16 }
 0x1b1   : > { %2202 = vmatmul.mubr.bf16.vlgmr.msra.gmra.mrb[64].mxu1 %v4145_v33  ;;  %v1286_v33 = vshll.u32 %v4352_v18, 16 }
 0x1b2   : > { %2209 = vmatprep.mubr.bf16.mxu1 %v4226_v43  ;;  %3337 = vmatpush3.bf16.msra.mxu1 %v3491_v22 }
 0x1b3   : > { %v1288_v43 = vrot.slane %v1286_v33, 1  ;;  %3338 = vmatprep.subr.bf16.mxu1 %v3492_v37 }
 0x1b6   : > { %3339 = vmatpush3.bf16.msra.mxu1 %v3492_v37 }
 0x1b7   : > { %3340 = vmatprep.subr.bf16.mxu1 %v3493_v7 }
 0x1b9   : > { %2210 = vmatmul.mubr.bf16.gmra.mrb[68].mxu1 %v4198_v12  ;;  %v1284_v12 = vshrl.u32 %v4352_v18, 16 }
 0x1ba   : > { %2217 = vmatprep.mubr.bf16.mxu1 %v4251_v54  ;;  %3341 = vmatpush3.bf16.msra.mxu1 %v3493_v7 }
 0x1bb   : > { %v1289_v0 = vor.u32 %v1288_v43, %v1284_v12  ;;  %3342 = vmatprep.subr.bf16.mxu1 %v3494_v31 }
 0x1be   : > { %3343 = vmatpush3.bf16.msra.mxu1 %v3494_v31 }
 0x1c1   : > { %2218 = vmatmul.mubr.bf16.gmra.mrb[72].mxu1 %v4231_v45  ;;  %v1293_v45 = vrot.slane %v1291_v3, 1 }
 0x1c2   : > { %2225 = vmatprep.mubr.bf16.mxu1 %v4271_v8 }
 0x1c3   : > { %v1294_v54 = vsel %vm1110_vm14, %v1289_v0, %v1293_v45 }
 0x1c9   : > { %2226 = vmatmul.mubr.bf16.gmra.mrb[76].mxu1 %v4255_v17 }
 0x1ca   : > { %2233 = vmatprep.mubr.bf16.mxu1 %v4293_v40 }
 0x1d1   : > { %2234 = vmatmul.mubr.bf16.gmra.mrb[80].mxu1 %v4273_v60 }
 0x1d2   : > { %2241 = vmatprep.mubr.bf16.mxu1 %v4313_v48 }
 0x1d9   : > { %2242 = vmatmul.mubr.bf16.gmra.mrb[84].mxu1 %v4297_v46 }
 0x1da   : > { %2249 = vmatprep.mubr.bf16.mxu1 %v4345_v58 }
 0x1e1   : > { %2250 = vmatmul.mubr.bf16.gmra.mrb[88].mxu1 %v4318_v20 }
 0x1e2   : > { %2257 = vmatprep.mubr.bf16.mxu1 %v1294_v54 }
 0x1e9   : > { %2258 = vmatmul.mubr.bf16.gmra.mrb[92].mxu1 %v4352_v18  ;;  %v2956_v17 = vpop.f32.mrb[0].mxu1  ;;  %v3495_v18 = vld [vmem:[%s4789_s9 + $0x20] sm:$0xff]  }
 0x1ea   : > { %v2957_v50 = vpop.f32.mrb[1].mxu1  ;;  %3344 = vmatprep.subr.bf16.mxu1 %v3495_v18 }
 0x1eb   : > { %v4424_v8 = vadd.f32 %v2957_v50, %v2956_v17  ;;  %v2959_v60 = vpop.f32.mrb[2].mxu1  ;;  %3345 = vmatpush3.bf16.msra.mxu1 %v3495_v18 }
 0x1ec   : > { %v2960_v29 = vpop.f32.mrb[3].mxu1  ;;  %3346 = vmatprep.subr.bf16.mxu1 %v3496_v10 }
 0x1ed   : > { %v4426_v40 = vadd.f32 %v2960_v29, %v2959_v60 }
 0x1ef   : > { %3347 = vmatpush3.bf16.msra.mxu1 %v3496_v10 }
 0x1f0   : > { %3348 = vmatprep.subr.bf16.mxu1 %v3497_v21 }
 0x1f3   : > { %v3084_v46 = vpop.f32.mrb[60].mxu0  ;;  %3349 = vmatpush3.bf16.msra.mxu1 %v3497_v21 }
 0x1f4   : > { %v2962_v63 = vpop.f32.mrb[4].mxu1  ;;  %v3085_v48 = vpop.f32.mrb[61].mxu0  ;;  %3350 = vmatprep.subr.bf16.mxu1 %v3498_v25 }
 0x1f5   : > { %v4428_v30 = vadd.f32 %v3085_v48, %v3084_v46  ;;  %v2963_v23 = vpop.f32.mrb[5].mxu1  ;;  %v3087_v20 = vpop.f32.mrb[62].mxu0 }
 0x1f6   : > { %v4430_v36 = vadd.f32 %v2963_v23, %v2962_v63  ;;  %v2965_v39 = vpop.f32.mrb[6].mxu1  ;;  %v3088_v44 = vpop.f32.mrb[63].mxu0 }
 0x1f7   : > { %v4432_v14 = vadd.f32 %v3088_v44, %v3087_v20  ;;  %v2966_v1 = vpop.f32.mrb[7].mxu1  ;;  %3351 = vmatpush3.bf16.msra.mxu1 %v3498_v25 }
 0x1f8   : > { %v4434_v47 = vadd.f32 %v2966_v1, %v2965_v39 }
 0x200   : > { %v3090_v34 = vpop.f32.mrb[64].mxu0 }
 0x201   : > { %v2968_v53 = vpop.f32.mrb[8].mxu1  ;;  %v3091_v55 = vpop.f32.mrb[65].mxu0 }
 0x202   : > { %v4442_v5 = vadd.f32 %v3091_v55, %v3090_v34  ;;  %v2969_v56 = vpop.f32.mrb[9].mxu1  ;;  %v3093_v57 = vpop.f32.mrb[66].mxu0 }
 0x203   : > { %v4444_v16 = vadd.f32 %v2969_v56, %v2968_v53  ;;  %v2971_v15 = vpop.f32.mrb[10].mxu1  ;;  %v3094_v61 = vpop.f32.mrb[67].mxu0 }
 0x204   : > { %v4446_v38 = vadd.f32 %v3094_v61, %v3093_v57  ;;  %v2972_v4 = vpop.f32.mrb[11].mxu1 }
 0x205   : > { %v4451_v35 = vadd.f32 %v2972_v4, %v2971_v15 }
 0x20b   : > { %v3096_v58 = vpop.f32.mrb[68].mxu0 }
 0x20c   : > { %v2974_v32 = vpop.f32.mrb[12].mxu1  ;;  %v3097_v13 = vpop.f32.mrb[69].mxu0 }
 0x20d   : > { %v4459_v42 = vadd.f32 %v3097_v13, %v3096_v58  ;;  %v2975_v49 = vpop.f32.mrb[13].mxu1  ;;  %v3099_v9 = vpop.f32.mrb[70].mxu0 }
 0x20e   : > { %v4461_v62 = vadd.f32 %v2975_v49, %v2974_v32  ;;  %v2977_v41 = vpop.f32.mrb[14].mxu1  ;;  %v3100_v2 = vpop.f32.mrb[71].mxu0 }
 0x20f   : > { %v4463_v52 = vadd.f32 %v3100_v2, %v3099_v9  ;;  %v2978_v6 = vpop.f32.mrb[15].mxu1 }
 0x210   : > { %v4465_v19 = vadd.f32 %v2978_v6, %v2977_v41 }
 0x218   : > { %v3102_v59 = vpop.f32.mrb[72].mxu0 }
 0x219   : > { %v2980_v11 = vpop.f32.mrb[16].mxu1  ;;  %v3103_v24 = vpop.f32.mrb[73].mxu0 }
 0x21a   : > { %v4476_v26 = vadd.f32 %v3103_v24, %v3102_v59  ;;  %v2981_v51 = vpop.f32.mrb[17].mxu1  ;;  %v3105_v28 = vpop.f32.mrb[74].mxu0 }
 0x21b   : > { %v4478_v27 = vadd.f32 %v2981_v51, %v2980_v11  ;;  %v2983_v33 = vpop.f32.mrb[18].mxu1  ;;  %v3106_v3 = vpop.f32.mrb[75].mxu0 }
 0x21c   : > { %v4480_v12 = vadd.f32 %v3106_v3, %v3105_v28  ;;  %v2984_v43 = vpop.f32.mrb[19].mxu1 }
 0x21d   : > { %v4482_v45 = vadd.f32 %v2984_v43, %v2983_v33 }
 0x223   : > { %v3108_v0 = vpop.f32.mrb[76].mxu0 }
 0x224   : > { %v2986_v54 = vpop.f32.mrb[20].mxu1  ;;  %v3109_v17 = vpop.f32.mrb[77].mxu0 }
 0x225   : > { %v4484_v50 = vadd.f32 %v3109_v17, %v3108_v0  ;;  %v2987_v60 = vpop.f32.mrb[21].mxu1  ;;  %v3111_v29 = vpop.f32.mrb[78].mxu0 }
 0x226   : > { %v4486_v46 = vadd.f32 %v2987_v60, %v2986_v54  ;;  %v2989_v63 = vpop.f32.mrb[22].mxu1  ;;  %v3112_v48 = vpop.f32.mrb[79].mxu0 }
 0x227   : > { %v4488_v23 = vadd.f32 %v3112_v48, %v3111_v29  ;;  %v2990_v20 = vpop.f32.mrb[23].mxu1 }
 0x228   : > { %v4490_v39 = vadd.f32 %v2990_v20, %v2989_v63 }
 0x230   : > { %v3114_v44 = vpop.f32.mrb[80].mxu0 }
 0x231   : > { %v2992_v1 = vpop.f32.mrb[24].mxu1  ;;  %v3115_v22 = vpop.f32.mrb[81].mxu0 }
 0x232   : > { %v4492_v34 = vadd.f32 %v3115_v22, %v3114_v44  ;;  %v2993_v37 = vpop.f32.mrb[25].mxu1  ;;  %v3117_v53 = vpop.f32.mrb[82].mxu0 }
 0x233   : > { %v4494_v55 = vadd.f32 %v2993_v37, %v2992_v1  ;;  %v2995_v56 = vpop.f32.mrb[26].mxu1  ;;  %v3118_v57 = vpop.f32.mrb[83].mxu0 }
 0x234   : > { %v4496_v15 = vadd.f32 %v3118_v57, %v3117_v53  ;;  %v2996_v61 = vpop.f32.mrb[27].mxu1 }
 0x235   : > { %v4498_v4 = vadd.f32 %v2996_v61, %v2995_v56 }
 0x23b   : > { %v3120_v7 = vpop.f32.mrb[84].mxu0 }
 0x23c   : > { %v2998_v31 = vpop.f32.mrb[28].mxu1  ;;  %v3121_v58 = vpop.f32.mrb[85].mxu0 }
 0x23d   : > { %v4500_v32 = vadd.f32 %v3121_v58, %v3120_v7  ;;  %v2999_v13 = vpop.f32.mrb[29].mxu1  ;;  %v3123_v18 = vpop.f32.mrb[86].mxu0 }
 0x23e   : > { %v4502_v49 = vadd.f32 %v2999_v13, %v2998_v31  ;;  %v3001_v9 = vpop.f32.mrb[30].mxu1  ;;  %v3124_v41 = vpop.f32.mrb[87].mxu0 }
 0x23f   : > { %v4504_v2 = vadd.f32 %v3124_v41, %v3123_v18  ;;  %v3002_v6 = vpop.f32.mrb[31].mxu1 }
 0x240   : > { %v4506_v10 = vadd.f32 %v3002_v6, %v3001_v9 }
 0x244   : > { %v3020_v21 = vpop.f32.mrb[32].mxu1 }
 0x245   : > { %v3021_v59 = vpop.f32.mrb[33].mxu1 }
 0x246   : > { %v3022_v25 = vadd.f32 %v3021_v59, %v3020_v21  ;;  %v3023_v11 = vpop.f32.mrb[34].mxu1 }
 0x247   : > { %v3024_v24 = vpop.f32.mrb[35].mxu1 }
 0x248   : > { %v2010_v51 = vadd.f32 %v3022_v25, %v4424_v8  ;;  %v3025_v28 = vadd.f32 %v3024_v24, %v3023_v11  ;;  %v3126_v33 = vpop.f32.mrb[88].mxu0 }
 0x249   : > { %v3127_v3 = vpop.f32.mrb[89].mxu0 }
 0x24a   : > { %v2013_v43 = vadd.f32 %v3025_v28, %v4426_v40  ;;  %v4510_v0 = vadd.f32 %v3127_v3, %v3126_v33  ;;  %v3129_v54 = vpop.f32.mrb[90].mxu0  ;;  %v4513_v17 = vadd.f32 %v4428_v30, %v2010_v51 }
 0x24b   : > { %v3130_v60 = vpop.f32.mrb[91].mxu0 }
 0x24c   : > { %v3026_v29 = vpop.f32.mrb[36].mxu1  ;;  %v4515_v63 = vadd.f32 %v3130_v60, %v3129_v54  ;;  %v4518_v48 = vadd.f32 %v4432_v14, %v2013_v43 }
 0x24d   : > { %v3027_v20 = vpop.f32.mrb[37].mxu1 }
 0x24e   : > { %v3028_v8 = vadd.f32 %v3027_v20, %v3026_v29  ;;  %v3029_v44 = vpop.f32.mrb[38].mxu1 }
 0x24f   : > { %v3030_v1 = vpop.f32.mrb[39].mxu1 }
 0x250   : > { %v2018_v22 = vadd.f32 %v3028_v8, %v4430_v36  ;;  %v3031_v40 = vadd.f32 %v3030_v1, %v3029_v44  ;;  %v4521_v37 = vpop.f32.mrb[92].mxu0 }
 0x251   : > { %v4523_v53 = vpop.f32.mrb[93].mxu0 }
 0x252   : > { %v2021_v30 = vadd.f32 %v3031_v40, %v4434_v47  ;;  %v4526_v56 = vpop.f32.mrb[94].mxu0  ;;  %v4529_v57 = vadd.f32 %v4442_v5, %v2018_v22 }
 0x253   : > { %v4531_v14 = vpop.f32.mrb[95].mxu0 }
 0x254   : > { %v3032_v61 = vpop.f32.mrb[40].mxu1  ;;  %v4534_v7 = vadd.f32 %v4446_v38, %v2021_v30 }
 0x255   : > { %v3033_v31 = vpop.f32.mrb[41].mxu1 }
 0x256   : > { %v3034_v36 = vadd.f32 %v3033_v31, %v3032_v61  ;;  %v3035_v58 = vpop.f32.mrb[42].mxu1 }
 0x257   : > { %v3036_v13 = vpop.f32.mrb[43].mxu1 }
 0x258   : > { %v2026_v18 = vadd.f32 %v3034_v36, %v4444_v16  ;;  %v3037_v9 = vadd.f32 %v3036_v13, %v3035_v58  ;;  %v4537_v41 = vpop.f32.mrb[96].mxu0 }
 0x259   : > { %v4539_v47 = vpop.f32.mrb[97].mxu0 }
 0x25a   : > { %v2029_v5 = vadd.f32 %v3037_v9, %v4451_v35  ;;  %v4542_v6 = vpop.f32.mrb[98].mxu0  ;;  %v4545_v21 = vadd.f32 %v4459_v42, %v2026_v18 }
 0x25b   : > { %v4547_v38 = vpop.f32.mrb[99].mxu0 }
 0x25c   : > { %v3038_v59 = vpop.f32.mrb[44].mxu1  ;;  %v4550_v25 = vadd.f32 %v4463_v52, %v2029_v5 }
 0x25d   : > { %v3039_v11 = vpop.f32.mrb[45].mxu1 }
 0x25e   : > { %v3040_v16 = vadd.f32 %v3039_v11, %v3038_v59  ;;  %v3041_v24 = vpop.f32.mrb[46].mxu1 }
 0x25f   : > { %v3042_v51 = vpop.f32.mrb[47].mxu1 }
 0x260   : > { %v2034_v28 = vadd.f32 %v3040_v16, %v4461_v62  ;;  %v3043_v33 = vadd.f32 %v3042_v51, %v3041_v24  ;;  %v4553_v3 = vpop.f32.mrb[100].mxu0 }
 0x261   : > { %v4555_v35 = vpop.f32.mrb[101].mxu0 }
 0x262   : > { %v2037_v42 = vadd.f32 %v3043_v33, %v4465_v19  ;;  %v4558_v43 = vpop.f32.mrb[102].mxu0  ;;  %v4561_v54 = vadd.f32 %v4476_v26, %v2034_v28 }
 0x263   : > { %v4563_v52 = vpop.f32.mrb[103].mxu0 }
 0x264   : > { %v3044_v60 = vpop.f32.mrb[48].mxu1  ;;  %v4566_v29 = vadd.f32 %v4480_v12, %v2037_v42 }
 0x265   : > { %v3045_v20 = vpop.f32.mrb[49].mxu1 }
 0x266   : > { %v3046_v62 = vadd.f32 %v3045_v20, %v3044_v60  ;;  %v3047_v8 = vpop.f32.mrb[50].mxu1 }
 0x267   : > { %v3048_v44 = vpop.f32.mrb[51].mxu1 }
 0x268   : > { %v2042_v1 = vadd.f32 %v3046_v62, %v4478_v27  ;;  %v3049_v22 = vadd.f32 %v3048_v44, %v3047_v8  ;;  %v4569_v40 = vpop.f32.mrb[104].mxu0 }
 0x269   : > { %v4571_v19 = vpop.f32.mrb[105].mxu0 }
 0x26a   : > { %v2045_v26 = vadd.f32 %v3049_v22, %v4482_v45  ;;  %v4574_v30 = vpop.f32.mrb[106].mxu0  ;;  %v4577_v61 = vadd.f32 %v4484_v50, %v2042_v1 }
 0x26b   : > { %v4579_v12 = vpop.f32.mrb[107].mxu0 }
 0x26c   : > { %v3050_v31 = vpop.f32.mrb[52].mxu1  ;;  %v4582_v36 = vadd.f32 %v4488_v23, %v2045_v26 }
 0x26d   : > { %v3051_v58 = vpop.f32.mrb[53].mxu1 }
 0x26e   : > { %v3052_v27 = vadd.f32 %v3051_v58, %v3050_v31  ;;  %v3053_v13 = vpop.f32.mrb[54].mxu1 }
 0x26f   : > { %v3054_v18 = vpop.f32.mrb[55].mxu1 }
 0x270   : > { %v2050_v9 = vadd.f32 %v3052_v27, %v4486_v46  ;;  %v3055_v5 = vadd.f32 %v3054_v18, %v3053_v13 }
 0x272   : > { %v2053_v45 = vadd.f32 %v3055_v5, %v4490_v39  ;;  %v4587_v59 = vadd.f32 %v4492_v34, %v2050_v9 }
 0x274   : > { %v3056_v50 = vpop.f32.mrb[56].mxu1  ;;  %v4590_v11 = vadd.f32 %v4496_v15, %v2053_v45 }
 0x275   : > { %v3057_v16 = vpop.f32.mrb[57].mxu1 }
 0x276   : > { %v3058_v24 = vadd.f32 %v3057_v16, %v3056_v50  ;;  %v3059_v23 = vpop.f32.mrb[58].mxu1 }
 0x277   : > { %v3060_v51 = vpop.f32.mrb[59].mxu1 }
 0x278   : > { %v2058_v28 = vadd.f32 %v3058_v24, %v4494_v55  ;;  %v3061_v33 = vadd.f32 %v3060_v51, %v3059_v23 }
 0x27a   : > { %v2061_v42 = vadd.f32 %v3061_v33, %v4498_v4  ;;  %v4595_v46 = vadd.f32 %v4500_v32, %v2058_v28 }
 0x27c   : > { %v3062_v39 = vpop.f32.mrb[60].mxu1  ;;  %v4598_v34 = vadd.f32 %v4504_v2, %v2061_v42 }
 0x27d   : > { %v3063_v60 = vpop.f32.mrb[61].mxu1 }
 0x27e   : > { %v3064_v20 = vadd.f32 %v3063_v60, %v3062_v39  ;;  %v3065_v15 = vpop.f32.mrb[62].mxu1 }
 0x27f   : > { %v3066_v62 = vpop.f32.mrb[63].mxu1 }
 0x280   : > { %v2066_v8 = vadd.f32 %v3064_v20, %v4502_v49  ;;  %v3067_v44 = vadd.f32 %v3066_v62, %v3065_v15  ;;  %v4612_v49 = vld [vmem:[%s4787_s7] ss:$0 sm:$0xff] }
 0x282   : > { %v2069_v1 = vadd.f32 %v3067_v44, %v4506_v10  ;;  %v4603_v55 = vadd.f32 %v4510_v0, %v2066_v8 }
 0x284   : > { %v3148_v4 = vpop.f32.mrb[64].mxu1  ;;  %v4606_v32 = vadd.f32 %v4515_v63, %v2069_v1  ;;  %v4619_v63 = vld [vmem:[%s4788_s8] ss:$0 sm:$0xff] }
 0x285   : > { %v3149_v22 = vpop.f32.mrb[65].mxu1 }
 0x286   : > { %v3150_v26 = vadd.f32 %v3149_v22, %v3148_v4  ;;  %v3151_v2 = vpop.f32.mrb[66].mxu1 }
 0x287   : > { %v3152_v31 = vpop.f32.mrb[67].mxu1 }
 0x288   : > { %v2204_v58 = vadd.f32 %v3150_v26, %v4513_v17  ;;  %v3153_v27 = vadd.f32 %v3152_v31, %v3151_v2 }
 0x28a   : > { %v2301_v10 = vadd.f32 %v4523_v53, %v2204_v58  ;;  %v2207_v0 = vadd.f32 %v3153_v27, %v4518_v48 }
 0x28c   : > { %v2370_v13 = vmul.f32 %v4612_v49, %v2301_v10  ;;  %v2304_v18 = vadd.f32 %v4531_v14, %v2207_v0  ;;  %v3154_v17 = vpop.f32.mrb[68].mxu1 }
 0x28d   : > { %v3155_v9 = vpop.f32.mrb[69].mxu1 }
 0x28e   : > { %v2371_v5 = vmul.f32 %v4612_v49, %v2304_v18  ;;  %v3156_v45 = vadd.f32 %v3155_v9, %v3154_v17  ;;  %v3157_v50 = vpop.f32.mrb[70].mxu1  ;;  %v2393_v16 = vadd.f32 %v4619_v63, %v2370_v13 }
 0x28f   : > { %v3158_v53 = vpop.f32.mrb[71].mxu1 }
 0x290   : > { %v2212_v48 = vadd.f32 %v3156_v45, %v4529_v57  ;;  %v3159_v24 = vadd.f32 %v3158_v53, %v3157_v50  ;;  %v2394_v23 = vadd.f32 %v4619_v63, %v2371_v5  ;;  %v2409_v33 = vmax.f32 %v2393_v16, 0.0 }
 0x292   : > { %v2309_v51 = vadd.f32 %v4521_v37, %v2212_v48  ;;  %v2215_v28 = vadd.f32 %v3159_v24, %v4534_v7  ;;  %v2410_v14 = vmax.f32 %v2394_v23, 0.0 }
 0x294   : > { %v2372_v42 = vmul.f32 %v4612_v49, %v2309_v51  ;;  %v2312_v39 = vadd.f32 %v4526_v56, %v2215_v28  ;;  %v3160_v60 = vpop.f32.mrb[72].mxu1  ;;  %v2425_v20 = vpack.c.bf16 %v2410_v14, %v2409_v33 }
 0x295   : > { %v3161_v15 = vpop.f32.mrb[73].mxu1 }
 0x296   : > { %v2395_v62 = vadd.f32 %v4619_v63, %v2372_v42  ;;  %v2373_v57 = vmul.f32 %v4612_v49, %v2312_v39  ;;  %v3162_v8 = vadd.f32 %v3161_v15, %v3160_v60  ;;  %v3163_v44 = vpop.f32.mrb[74].mxu1  ;;  %3352 = vmatprep.mubr.bf16.mxu1 %v2425_v20 }
 0x297   : > { %v3164_v1 = vpop.f32.mrb[75].mxu1 }
 0x298   : > { %v2396_v37 = vadd.f32 %v4619_v63, %v2373_v57  ;;  %v2220_v7 = vadd.f32 %v3162_v8, %v4545_v21  ;;  %v3165_v4 = vadd.f32 %v3164_v1, %v3163_v44  ;;  %v2411_v22 = vmax.f32 %v2395_v62, 0.0 }
 0x29a   : > { %v2412_v26 = vmax.f32 %v2396_v37, 0.0  ;;  %v2317_v56 = vadd.f32 %v4539_v47, %v2220_v7  ;;  %v2223_v2 = vadd.f32 %v3165_v4, %v4550_v25 }
 0x29c   : > { %v2426_v31 = vpack.c.bf16 %v2412_v26, %v2411_v22  ;;  %v2374_v58 = vmul.f32 %v4612_v49, %v2317_v56  ;;  %v2320_v27 = vadd.f32 %v4547_v38, %v2223_v2  ;;  %v3166_v10 = vpop.f32.mrb[76].mxu1 }
 0x29d   : > { %v3167_v0 = vpop.f32.mrb[77].mxu1 }
 0x29e   : > { %v2375_v13 = vmul.f32 %v4612_v49, %v2320_v27  ;;  %v3168_v18 = vadd.f32 %v3167_v0, %v3166_v10  ;;  %v3169_v17 = vpop.f32.mrb[78].mxu1  ;;  %3353 = vmatmul.mubr.bf16.vlgmr.msra.gmra.mrb[96].mxu1 %v2426_v31  ;;  %v2397_v21 = vadd.f32 %v4619_v63, %v2374_v58 }
 0x29f   : > { %v3170_v9 = vpop.f32.mrb[79].mxu1 }
 0x2a0   : > { %v2228_v5 = vadd.f32 %v3168_v18, %v4561_v54  ;;  %v3171_v47 = vadd.f32 %v3170_v9, %v3169_v17  ;;  %v2398_v25 = vadd.f32 %v4619_v63, %v2375_v13  ;;  %v2413_v38 = vmax.f32 %v2397_v21, 0.0 }
 0x2a2   : > { %v2325_v45 = vadd.f32 %v4537_v41, %v2228_v5  ;;  %v2231_v50 = vadd.f32 %v3171_v47, %v4566_v29  ;;  %v2414_v16 = vmax.f32 %v2398_v25, 0.0 }
 0x2a4   : > { %v2376_v53 = vmul.f32 %v4612_v49, %v2325_v45  ;;  %v2328_v48 = vadd.f32 %v4542_v6, %v2231_v50  ;;  %v3172_v24 = vpop.f32.mrb[80].mxu1  ;;  %v2427_v23 = vpack.c.bf16 %v2414_v16, %v2413_v38 }
 0x2a5   : > { %v3173_v51 = vpop.f32.mrb[81].mxu1 }
 0x2a6   : > { %v2377_v28 = vmul.f32 %v4612_v49, %v2328_v48  ;;  %v3174_v33 = vadd.f32 %v3173_v51, %v3172_v24  ;;  %v3175_v54 = vpop.f32.mrb[82].mxu1  ;;  %3356 = vmatprep.mubr.bf16.mxu1 %v2427_v23  ;;  %v2399_v14 = vadd.f32 %v4619_v63, %v2376_v53 }
 0x2a7   : > { %v3176_v42 = vpop.f32.mrb[83].mxu1 }
 0x2a8   : > { %v2236_v41 = vadd.f32 %v3174_v33, %v4577_v61  ;;  %v3177_v29 = vadd.f32 %v3176_v42, %v3175_v54  ;;  %v2400_v39 = vadd.f32 %v4619_v63, %v2377_v28  ;;  %v2415_v20 = vmax.f32 %v2399_v14, 0.0 }
 0x2aa   : > { %v2333_v60 = vadd.f32 %v4555_v35, %v2236_v41  ;;  %v2239_v6 = vadd.f32 %v3177_v29, %v4582_v36  ;;  %v2416_v15 = vmax.f32 %v2400_v39, 0.0 }
 0x2ac   : > { %v2378_v62 = vmul.f32 %v4612_v49, %v2333_v60  ;;  %v2336_v57 = vadd.f32 %v4563_v52, %v2239_v6  ;;  %v3178_v8 = vpop.f32.mrb[84].mxu1  ;;  %v2428_v44 = vpack.c.bf16 %v2416_v15, %v2415_v20  ;;  %v3499_v15 = vld [vmem:[%s3690_s29 + $0x30] sm:$0xff] }
 0x2ad   : > { %v3179_v1 = vpop.f32.mrb[85].mxu1 }
 0x2ae   : > { %v2379_v37 = vmul.f32 %v4612_v49, %v2336_v57  ;;  %v3180_v7 = vadd.f32 %v3179_v1, %v3178_v8  ;;  %v3181_v61 = vpop.f32.mrb[86].mxu1  ;;  %3357 = vmatmul.mubr.bf16.gmra.mrb[100].mxu1 %v2428_v44  ;;  %v2401_v4 = vadd.f32 %v4619_v63, %v2378_v62  ;;  %v2631_v62 = vrot.slane %v3499_v15, 1  ;;  %v3500_v57 = vld [vmem:[%s3690_s29 + $0x38] sm:$0xff]  ;;  %v3502_v1 = vld [vmem:[%s3690_s29 + $0x20] sm:$0xff] }
 0x2af   : > { %v3182_v22 = vpop.f32.mrb[87].mxu1  ;;  %v3501_v8 = vld [vmem:[%s3690_s29 + $0x18] sm:$0xff] }
 0x2b0   : > { %v2244_v35 = vadd.f32 %v3180_v7, %v4587_v59  ;;  %v3183_v36 = vadd.f32 %v3182_v22, %v3181_v61  ;;  %v2402_v26 = vadd.f32 %v4619_v63, %v2379_v37  ;;  %v2417_v2 = vmax.f32 %v2401_v4, 0.0  ;;  %v4689_v37 = vld [vmem:[%s4790_s10] ss:$0 sm:$0xff]  ;;  %v3504_v61 = vld [vmem:[%s3690_s29 + $0x28] sm:$0xff] }
 0x2b1   : > { %v2626_v44 = vrot.slane %v3501_v8, 1  ;;  %v2629_v4 = vrot.slane %v3504_v61, 1 }
 0x2b2   : > { %v2341_v56 = vadd.f32 %v4553_v3, %v2244_v35  ;;  %v2247_v52 = vadd.f32 %v3183_v36, %v4590_v11  ;;  %v2418_v31 = vmax.f32 %v2402_v26, 0.0 }
 0x2b4   : > { %v2380_v58 = vmul.f32 %v4612_v49, %v2341_v56  ;;  %v2344_v27 = vadd.f32 %v4558_v43, %v2247_v52  ;;  %v3184_v10 = vpop.f32.mrb[88].mxu1  ;;  %v2429_v0 = vpack.c.bf16 %v2418_v31, %v2417_v2 }
 0x2b5   : > { %v3185_v13 = vpop.f32.mrb[89].mxu1 }
 0x2b6   : > { %v2381_v18 = vmul.f32 %v4612_v49, %v2344_v27  ;;  %v3186_v17 = vadd.f32 %v3185_v13, %v3184_v10  ;;  %v3187_v59 = vpop.f32.mrb[90].mxu1  ;;  %3360 = vmatprep.mubr.bf16.mxu1 %v2429_v0  ;;  %v2403_v21 = vadd.f32 %v4619_v63, %v2380_v58 }
 0x2b7   : > { %v3188_v9 = vpop.f32.mrb[91].mxu1 }
 0x2b8   : > { %v2252_v3 = vadd.f32 %v3186_v17, %v4595_v46  ;;  %v3189_v11 = vadd.f32 %v3188_v9, %v3187_v59  ;;  %v2404_v5 = vadd.f32 %v4619_v63, %v2381_v18  ;;  %v2419_v25 = vmax.f32 %v2403_v21, 0.0  ;;  %v3505_v21 = vld [vmem:[%s3690_s29 + $0x60] sm:$0xff] }
 0x2b9   : > { %v2641_v9 = vrot.slane %v3505_v21, 1 }
 0x2ba   : > { %v2349_v47 = vadd.f32 %v4571_v19, %v2252_v3  ;;  %v2255_v43 = vadd.f32 %v3189_v11, %v4598_v34  ;;  %v2420_v45 = vmax.f32 %v2404_v5, 0.0  ;;  %v3506_v3 = vld [vmem:[%s3690_s29 + $0x68] sm:$0xff] }
 0x2bb   : > { %v2642_v11 = vrot.slane %v3506_v3, 1  ;;  %v3507_v5 = vld [vmem:[%s3690_s29 + $0x48] sm:$0xff] }
 0x2bc   : > { %v2382_v50 = vmul.f32 %v4612_v49, %v2349_v47  ;;  %v2352_v38 = vadd.f32 %v4579_v12, %v2255_v43  ;;  %v3190_v16 = vpop.f32.mrb[92].mxu1  ;;  %v2430_v53 = vpack.c.bf16 %v2420_v45, %v2419_v25  ;;  %v2636_v47 = vrot.slane %v3507_v5, 1  ;;  %v3508_v43 = vld [vmem:[%s3690_s29 + $0x50] sm:$0xff] }
 0x2bd   : > { %v3191_v48 = vpop.f32.mrb[93].mxu1  ;;  %v2637_v25 = vrot.slane %v3508_v43, 1  ;;  %v3509_v45 = vld [vmem:[%s3690_s29 + $0x70] sm:$0xff] }
 0x2be   : > { %v2383_v24 = vmul.f32 %v4612_v49, %v2352_v38  ;;  %v3192_v23 = vadd.f32 %v3191_v48, %v3190_v16  ;;  %v3193_v46 = vpop.f32.mrb[94].mxu1  ;;  %3361 = vmatmul.mubr.bf16.gmra.mrb[104].mxu1 %v2430_v53  ;;  %v2405_v51 = vadd.f32 %v4619_v63, %v2382_v50  ;;  %v2644_v50 = vrot.slane %v3509_v45, 1  ;;  %v3510_v38 = vld [vmem:[%s3690_s29 + $0x58] sm:$0xff] }
 0x2bf   : > { %v3194_v28 = vpop.f32.mrb[95].mxu1  ;;  %v2639_v16 = vrot.slane %v3510_v38, 1  ;;  %v2643_v48 = vsel %vm1231_vm13, %v2641_v9, %v2642_v11  ;;  %v3521_v9 = vld [vmem:[%s3690_s29 + $0xd0] sm:$0xff] }
 0x2c0   : > { %v2260_v19 = vadd.f32 %v3192_v23, %v4603_v55  ;;  %v3195_v34 = vadd.f32 %v3194_v28, %v3193_v46  ;;  %v2406_v33 = vadd.f32 %v4619_v63, %v2383_v24  ;;  %v2421_v14 = vmax.f32 %v2405_v51, 0.0 }
 0x2c1   : > { %v2638_v46 = vsel %vm1231_vm13, %v2636_v47, %v2637_v25  ;;  %v2664_v3 = vrot.slane %v3521_v9, 1 }
 0x2c2   : > { %v2357_v54 = vadd.f32 %v4569_v40, %v2260_v19  ;;  %v2263_v12 = vadd.f32 %v3195_v34, %v4606_v32  ;;  %v2422_v42 = vmax.f32 %v2406_v33, 0.0  ;;  %v2645_v19 = vsel %vm1231_vm13, %v2642_v11, %v2644_v50  ;;  %v3522_v11 = vld [vmem:[%s3690_s29 + $0xb8] sm:$0xff] }
 0x2c3   : > { %v2659_v5 = vrot.slane %v3522_v11, 1 }
 0x2c4   : > { %v2384_v41 = vmul.f32 %v4612_v49, %v2357_v54  ;;  %v2360_v29 = vadd.f32 %v4574_v30, %v2263_v12  ;;  %v2431_v39 = vpack.c.bf16 %v2422_v42, %v2421_v14  ;;  %v2632_v30 = vrot.slane %v3500_v57, 1 }
 0x2c5   : > { %v2640_v12 = vsel %vm1231_vm13, %v2637_v25, %v2639_v16 }
 0x2c6   : > { %v2385_v55 = vmul.f32 %v4612_v49, %v2360_v29  ;;  %3364 = vmatprep.mubr.bf16.mxu1 %v2431_v39  ;;  %v2407_v60 = vadd.f32 %v4619_v63, %v2384_v41  ;;  %v2627_v49 = vrot.slane %v3502_v1, 1  ;;  %v2633_v35 = vsel %vm1231_vm13, %v2631_v62, %v2632_v30  ;;  %v3511_v39 = vld [vmem:[%s3690_s29 + $0x90] sm:$0xff]  ;;  %v3515_v62 = vld [vmem:[%s3690_s29 + $0xa0] sm:$0xff] }
 0x2c7   : > { %v2654_v57 = vrot.slane %v3515_v62, 1 }
 0x2c8   : > { %v2408_v40 = vadd.f32 %v4619_v63, %v2385_v55  ;;  %v2423_v32 = vmax.f32 %v2407_v60, 0.0  ;;  %v3503_v63 = vld [vmem:[%s3690_s29 + $0x40] sm:$0xff]  ;;  %v2628_v56 = vsel %vm1231_vm13, %v2626_v44, %v2627_v49  ;;  %v2630_v0 = vsel %vm1231_vm13, %v2627_v49, %v2629_v4  ;;  %v3512_v60 = vld [vmem:[%s3690_s29 + $0x98] sm:$0xff] }
 0x2c9   : > { %v2634_v7 = vrot.slane %v3503_v63, 1  ;;  %v2651_v55 = vrot.slane %v3511_v39, 1 }
 0x2ca   : > { %v2424_v6 = vmax.f32 %v2408_v40, 0.0  ;;  %v2652_v40 = vrot.slane %v3512_v60, 1 }
 0x2cb   : > { %v2635_v31 = vsel %vm1231_vm13, %v2632_v30, %v2634_v7  ;;  %v3516_v30 = vld [vmem:[%s3690_s29 + $0x88] sm:$0xff] }
 0x2cc   : > { %v2432_v20 = vpack.c.bf16 %v2424_v6, %v2423_v32  ;;  %v3513_v32 = vld [vmem:[%s3690_s29 + $0x78] sm:$0xff]  ;;  %v2649_v8 = vrot.slane %v3516_v30, 1  ;;  %v2653_v1 = vsel %vm1231_vm13, %v2651_v55, %v2652_v40 }
 0x2cd   : > { %v2646_v6 = vrot.slane %v3513_v32, 1 }
 0x2ce   : > { %3365 = vmatmul.mubr.bf16.gmra.mrb[108].mxu1 %v2432_v20  ;;  %v3514_v20 = vld [vmem:[%s3690_s29 + $0x80] sm:$0xff] }
 0x2cf   : > { %v2647_v15 = vrot.slane %v3514_v20, 1 }
 0x2d1   : > { %v2648_v7 = vsel %vm1231_vm13, %v2646_v6, %v2647_v15 }
 0x371   : > { %v3354_v22 = vpop.f32.mrb[96].mxu1 }
 0x372   : > { %v2547_v36 = vadd.f32 %v3354_v22, %v4689_v37  ;;  %v2538_v26 = vpop.f32.mrb[97].mxu1  ;;  %v2655_v22 = vsel %vm1231_vm13, %v2652_v40, %v2654_v57 }
 0x373   : > { %v2539_v52 = vadd.f32 %v4689_v37, %v2538_v26  ;;  %v3355_v2 = vpop.f32.mrb[98].mxu1 }
 0x374   : > { %v2684_v58 = vadd.f32 %v2633_v35, %v2547_v36  ;;  %v2550_v27 = vadd.f32 %v3355_v2, %v4689_v37  ;;  %v2541_v10 = vpop.f32.mrb[99].mxu1 }
 0x375   : > { %v2682_v13 = vadd.f32 %v2628_v56, %v2539_v52  ;;  %v2542_v18 = vadd.f32 %v4689_v37, %v2541_v10  ;;  %v2650_v56 = vsel %vm1231_vm13, %v2647_v15, %v2649_v8 }
 0x376   : > { %2700 = vst [vmem:[%s4700_s24 + $0x10] sm:$0xff] %v2684_v58  ;;  %v2685_v17 = vadd.f32 %v2635_v31, %v2550_v27  ;;  %v3517_v27 = vld [vmem:[%s3690_s29 + $0xc0] sm:$0xff] }
 0x377   : > { %2698 = vst [vmem:[%s4700_s24] sm:$0xff] %v2682_v13  ;;  %v2683_v59 = vadd.f32 %v2630_v0, %v2542_v18  ;;  %v2661_v10 = vrot.slane %v3517_v27, 1  ;;  %v3518_v0 = vld [vmem:[%s3690_s29 + $0xc8] sm:$0xff] }
 0x378   : > { %2701 = vst [vmem:[%s4700_s24 + $0x18] sm:$0xff] %v2685_v17  ;;  %v2662_v13 = vrot.slane %v3518_v0, 1  ;;  %v3519_v18 = vld [vmem:[%s3690_s29 + $0xa8] sm:$0xff] }
 0x379   : > { %2699 = vst [vmem:[%s4700_s24 + $0x8] sm:$0xff] %v2683_v59  ;;  %v2656_v17 = vrot.slane %v3519_v18, 1  ;;  %v3520_v59 = vld [vmem:[%s3690_s29 + $0xb0] sm:$0xff] }
 0x37a   : > { %v2657_v21 = vrot.slane %v3520_v59, 1  ;;  %v2663_v43 = vsel %vm1231_vm13, %v2661_v10, %v2662_v13 }
 0x37c   : > { %v2658_v50 = vsel %vm1231_vm13, %v2656_v17, %v2657_v21 }
 0x381   : > { %v3358_v53 = vpop.f32.mrb[100].mxu1 }
 0x382   : > { %v2563_v24 = vadd.f32 %v3358_v53, %v4689_v37  ;;  %v2554_v23 = vpop.f32.mrb[101].mxu1  ;;  %v2665_v53 = vsel %vm1231_vm13, %v2662_v13, %v2664_v3 }
 0x383   : > { %v2555_v51 = vadd.f32 %v4689_v37, %v2554_v23  ;;  %v3359_v28 = vpop.f32.mrb[102].mxu1 }
 0x384   : > { %v2688_v34 = vadd.f32 %v2643_v48, %v2563_v24  ;;  %v2566_v33 = vadd.f32 %v3359_v28, %v4689_v37  ;;  %v2557_v54 = vpop.f32.mrb[103].mxu1 }
 0x385   : > { %v2686_v14 = vadd.f32 %v2638_v46, %v2555_v51  ;;  %v2558_v42 = vadd.f32 %v4689_v37, %v2557_v54  ;;  %v2660_v46 = vsel %vm1231_vm13, %v2657_v21, %v2659_v5 }
 0x386   : > { %2704 = vst [vmem:[%s4700_s24 + $0x30] sm:$0xff] %v2688_v34  ;;  %v2689_v41 = vadd.f32 %v2645_v19, %v2566_v33 }
 0x387   : > { %2702 = vst [vmem:[%s4700_s24 + $0x20] sm:$0xff] %v2686_v14  ;;  %v2687_v29 = vadd.f32 %v2640_v12, %v2558_v42 }
 0x388   : > { %2705 = vst [vmem:[%s4700_s24 + $0x38] sm:$0xff] %v2689_v41 }
 0x389   : > { %2703 = vst [vmem:[%s4700_s24 + $0x28] sm:$0xff] %v2687_v29 }
 0x391   : > { %v3362_v44 = vpop.f32.mrb[104].mxu1 }
 0x392   : > { %v2579_v49 = vadd.f32 %v3362_v44, %v4689_v37  ;;  %v2570_v63 = vpop.f32.mrb[105].mxu1 }
 0x393   : > { %v2571_v61 = vadd.f32 %v4689_v37, %v2570_v63  ;;  %v3363_v4 = vpop.f32.mrb[106].mxu1 }
 0x394   : > { %v2692_v35 = vadd.f32 %v2653_v1, %v2579_v49  ;;  %v2582_v36 = vadd.f32 %v3363_v4, %v4689_v37  ;;  %v2573_v26 = vpop.f32.mrb[107].mxu1 }
 0x395   : > { %v2690_v52 = vadd.f32 %v2648_v7, %v2571_v61  ;;  %v2574_v2 = vadd.f32 %v4689_v37, %v2573_v26 }
 0x396   : > { %2708 = vst [vmem:[%s4700_s24 + $0x50] sm:$0xff] %v2692_v35  ;;  %v2693_v31 = vadd.f32 %v2655_v22, %v2582_v36 }
 0x397   : > { %2706 = vst [vmem:[%s4700_s24 + $0x40] sm:$0xff] %v2690_v52  ;;  %v2691_v58 = vadd.f32 %v2650_v56, %v2574_v2 }
 0x398   : > { %2709 = vst [vmem:[%s4700_s24 + $0x58] sm:$0xff] %v2693_v31 }
 0x399   : > { %2707 = vst [vmem:[%s4700_s24 + $0x48] sm:$0xff] %v2691_v58 }
 0x3a1   : > { %v3366_v47 = vpop.f32.mrb[108].mxu1 }
 0x3a2   : > { %v2595_v25 = vadd.f32 %v3366_v47, %v4689_v37  ;;  %v2586_v45 = vpop.f32.mrb[109].mxu1 }
 0x3a3   : > { %v2587_v38 = vadd.f32 %v4689_v37, %v2586_v45  ;;  %v3367_v16 = vpop.f32.mrb[110].mxu1 }
 0x3a4   : > { %v2696_v48 = vadd.f32 %v2663_v43, %v2595_v25  ;;  %v2598_v24 = vadd.f32 %v3367_v16, %v4689_v37  ;;  %v2589_v23 = vpop.f32.mrb[111].mxu1 }
 0x3a5   : > { %v2694_v51 = vadd.f32 %v2658_v50, %v2587_v38  ;;  %v2590_v28 = vadd.f32 %v4689_v37, %v2589_v23 }
 0x3a6   : > { %2712 = vst [vmem:[%s4700_s24 + $0x70] sm:$0xff] %v2696_v48  ;;  %v2697_v19 = vadd.f32 %v2665_v53, %v2598_v24 }
 0x3a7   : > { %2710 = vst [vmem:[%s4700_s24 + $0x60] sm:$0xff] %v2694_v51  ;;  %v2695_v34 = vadd.f32 %v2660_v46, %v2590_v28 }
 0x3a8   : > { %2713 = vst [vmem:[%s4700_s24 + $0x78] sm:$0xff] %v2697_v19 }
 0x3a9   : > { %2711 = vst [vmem:[%s4700_s24 + $0x68] sm:$0xff] %v2695_v34 }
 0x3aa PF: > { %s21_s21 = sadd.s32 1, %s3561_s21   ;;  %s4796_s17 = smov %s3553_s19 }
 0x3ab   : > { %p18_p7 = scmp.ge.s32.totalorder %s21_s21, 6   ;;  %s4797_s18 = smov %s3557_s20 }
 0x3ac   : > { %s4798_s19 = smov %s4801_s22  ;;  %s4799_s20 = smov %s4805_s23 }
 0x3ad   :  { %20 = sbr.rel (!%p18_p7) target bundleno = 3 (0x3), region = 95 }

</bundles_post_ra>
